<compile_context>
chip_gen: v7x
topology: tpu7x:2x2x1
jax: 0.10.0
libtpu: 0.0.40
codegen_flags: <defaults>
</compile_context>

<pallas_src>
import functools

import jax
import jax.numpy as jnp
from jax import lax
from jax.experimental import pallas as pl
from jax.experimental.pallas import tpu as pltpu  # noqa: F401

NH = 512          # hidden width (from the module)
EPS = 1e-5        # BatchNorm2d default eps
SLOPE = 0.01      # nn.LeakyReLU() default negative_slope


def _bn_lrelu(h, gamma, beta):
    # Training-mode BatchNorm2d over the batch axis (spatial dims are 1x1):
    # one-pass biased statistics, folded to a single scale/shift FMA, then
    # LeakyReLU(0.01).  All in f32 (bf16 elementwise would be emulated on v5e).
    mu = jnp.mean(h, axis=0, keepdims=True)
    msq = jnp.mean(h * h, axis=0, keepdims=True)
    var = msq - mu * mu
    scale = gamma * lax.rsqrt(var + EPS)
    shift = beta - mu * scale
    hn = h * scale + shift
    return jnp.where(hn >= 0, hn, SLOPE * hn)


def dn_dis_dann_kernel(x_ref, w1_ref, w2_ref, w3_ref, slab_ref, o_ref, *, d):
    # slab_ref (8 + pad8(d), NH) f32 rows:
    #   0=g1 1=be1 2=g2 3=be2 4=g3 5=be3 6=linear bias (lanes 0:d) 7=pad
    #   8.. = linear weight rows (d rows, zero-padded to a multiple of 8).
    x = x_ref[...].astype(jnp.bfloat16)        # in-kernel cast: free VPU slot

    # layer 1: 1x1 conv == channel matmul (bf16 operands, f32 MXU accumulation)
    h = jnp.dot(x, w1_ref[...], preferred_element_type=jnp.float32)
    h = _bn_lrelu(h, slab_ref[0:1, :], slab_ref[1:2, :])

    # layer 2
    h = jnp.dot(h.astype(jnp.bfloat16), w2_ref[...],
                preferred_element_type=jnp.float32)
    h = _bn_lrelu(h, slab_ref[2:3, :], slab_ref[3:4, :])

    # layer 3
    h = jnp.dot(h.astype(jnp.bfloat16), w3_ref[...],
                preferred_element_type=jnp.float32)
    h = _bn_lrelu(h, slab_ref[4:5, :], slab_ref[5:6, :])

    # squeeze + Linear(NH, d): single MXU contraction over the 512-channel
    # axis (the MXU is idle here, so a lane-degenerate N is effectively free).
    d_pad = slab_ref.shape[0] - 8                               # static
    wl = slab_ref[8:8 + d_pad, :].astype(jnp.bfloat16)          # (d_pad, NH)
    logits = lax.dot_general(h.astype(jnp.bfloat16), wl,
                             dimension_numbers=(((1,), (1,)), ((), ())),
                             preferred_element_type=jnp.float32)  # (B, d_pad)
    o_ref[...] = logits[:, :d] + slab_ref[6:7, 0:d]


def _full_spec(shape):
    return pl.BlockSpec(shape, lambda: (0,) * len(shape))


def dn_dis_dann_forward(x_nchw, params, domain_num):
    """x_nchw: (B, nz, 1, 1) float32 -> (B, domain_num) float32 logits."""
    B, nz, H, W = x_nchw.shape
    assert H == 1 and W == 1, "DN_Dis_DANN expects 1x1 spatial features"

    w1, w2, w3, slab = params
    D = domain_num

    # Metadata-only reshape; the bf16 cast happens inside the kernel.
    x = x_nchw.reshape(B, nz)
    args = (x, w1, w2, w3, slab)

    flops = 2 * B * (nz * NH + 2 * NH * NH + NH * D)
    bytes_accessed = sum(int(a.size) * a.dtype.itemsize for a in args) \
        + B * D * 4

    kernel = functools.partial(dn_dis_dann_kernel, d=D)
    out = pl.pallas_call(
        kernel,
        out_shape=jax.ShapeDtypeStruct((B, D), jnp.float32),
        grid=(),
        in_specs=[_full_spec(a.shape) for a in args],
        out_specs=_full_spec((B, D)),
        cost_estimate=pl.CostEstimate(
            flops=flops,
            transcendentals=3 * NH,          # rsqrt per BN channel per layer
            bytes_accessed=bytes_accessed),
    )(*args)
    return out


def init_params(key, nz, domain_num):
    """Parameters matching the module's shapes.

    Conv2d(cin, cout, 1) weight (cout, cin, 1, 1) is stored transposed as
    (cin, cout) in bf16.  Conv biases are NOT materialized (training-mode BN
    cancels them exactly).  BN gamma/beta (PyTorch defaults 1/0), the Linear
    bias and the lane-dense (domain_num, NH) Linear weight are all packed into
    one (8 + pad8(domain_num), NH) f32 slab so they arrive in a single DMA.
    """
    ks = jax.random.split(key, 5)

    def conv_w(k, cin, cout):
        return (jax.random.normal(k, (cin, cout), jnp.float32) * 0.05
                ).astype(jnp.bfloat16)

    w1 = conv_w(ks[0], nz, NH)
    w2 = conv_w(ks[1], NH, NH)
    w3 = conv_w(ks[2], NH, NH)

    wl = jax.random.normal(ks[3], (domain_num, NH), jnp.float32) * 0.05
    bl = jax.random.normal(ks[4], (domain_num,), jnp.float32) * 0.05

    assert domain_num <= NH, "linear bias row packing assumes domain_num <= NH"
    d_pad = -(-domain_num // 8) * 8
    slab = jnp.zeros((8 + d_pad, NH), jnp.float32)
    slab = slab.at[0].set(1.0)                      # gamma1 (row 1: beta1 = 0)
    slab = slab.at[2].set(1.0)                      # gamma2 (row 3: beta2 = 0)
    slab = slab.at[4].set(1.0)                      # gamma3 (row 5: beta3 = 0)
    slab = slab.at[6, :domain_num].set(bl)          # linear bias
    slab = slab.at[8:8 + domain_num, :].set(wl)     # linear weight rows
    # row 7 and any trailing weight rows are zero padding.

    return (w1, w2, w3, slab)


if __name__ == "__main__":
    key = jax.random.PRNGKey(0)
    k_x, k_p = jax.random.split(key)

    B, nz, domain_num = 8, 32, 4          # small shapes: opt.nz=32, 4 domains
    x = jax.random.normal(k_x, (B, nz, 1, 1), jnp.float32)
    params = init_params(k_p, nz, domain_num)

    out = dn_dis_dann_forward(x, params, domain_num)
    out = jax.block_until_ready(out)

    assert out.shape == (B, domain_num)
    assert bool(jnp.all(jnp.isfinite(out)))
    # TODO(synk): BatchNorm running_mean/running_var updates (module state) are
    # not produced; only the training-mode forward output is reproduced.
    print("KERNEL_OK")
</pallas_src>

<mosaic_0001>
module attributes {stable_mosaic.version = 11 : i64} {
  func.func @dn_dis_dann_kernel(%arg0: memref<8x32xf32, #tpu.memory_space<vmem>>, %arg1: memref<32x512xbf16, #tpu.memory_space<vmem>>, %arg2: memref<512x512xbf16, #tpu.memory_space<vmem>>, %arg3: memref<512x512xbf16, #tpu.memory_space<vmem>>, %arg4: memref<16x512xf32, #tpu.memory_space<vmem>>, %arg5: memref<8x4xf32, #tpu.memory_space<vmem>>) attributes {dimension_semantics = [], scalar_prefetch = 0 : i64, scratch_operands = 0 : i64, tpu.core_type = #tpu.core_type<tc>} {
    %c0 = arith.constant 0 : index
    %c0_0 = arith.constant 0 : index
    %0 = vector.load %arg0[%c0, %c0_0] : memref<8x32xf32, #tpu.memory_space<vmem>>, vector<8x32xf32>
    %1 = arith.truncf %0 : vector<8x32xf32> to vector<8x32xbf16>
    %c0_1 = arith.constant 0 : index
    %c0_2 = arith.constant 0 : index
    %2 = vector.load %arg1[%c0_1, %c0_2] : memref<32x512xbf16, #tpu.memory_space<vmem>>, vector<32x512xbf16>
    %cst = arith.constant dense<0.000000e+00> : vector<8x512xf32>
    %3 = tpu.matmul %1, %2, %cst {dimension_numbers = #tpu.dot_dimension_numbers<[1], [0], [0], [1], [0, 0, 1, 1], [], []>} : vector<8x32xbf16>, vector<32x512xbf16>, vector<8x512xf32> -> vector<8x512xf32>
    %c0_3 = arith.constant 0 : index
    %c0_4 = arith.constant 0 : index
    %4 = vector.load %arg4[%c0_3, %c0_4] : memref<16x512xf32, #tpu.memory_space<vmem>>, vector<1x512xf32>
    %c1 = arith.constant 1 : index
    %c0_5 = arith.constant 0 : index
    %5 = vector.load %arg4[%c1, %c0_5] : memref<16x512xf32, #tpu.memory_space<vmem>>, vector<1x512xf32>
    %cst_6 = arith.constant dense<0.000000e+00> : vector<512xf32>
    %6 = vector.multi_reduction <add>, %3, %cst_6 [0] : vector<8x512xf32> to vector<512xf32>
    %7 = vector.shape_cast %6 : vector<512xf32> to vector<1x512xf32>
    %cst_7 = arith.constant 8.000000e+00 : f32
    %8 = vector.broadcast %cst_7 : f32 to vector<1x512xf32>
    %9 = arith.divf %7, %8 : vector<1x512xf32>
    %10 = arith.mulf %3, %3 : vector<8x512xf32>
    %cst_8 = arith.constant dense<0.000000e+00> : vector<512xf32>
    %11 = vector.multi_reduction <add>, %10, %cst_8 [0] : vector<8x512xf32> to vector<512xf32>
    %12 = vector.shape_cast %11 : vector<512xf32> to vector<1x512xf32>
    %cst_9 = arith.constant 8.000000e+00 : f32
    %13 = vector.broadcast %cst_9 : f32 to vector<1x512xf32>
    %14 = arith.divf %12, %13 : vector<1x512xf32>
    %15 = arith.mulf %9, %9 : vector<1x512xf32>
    %16 = arith.subf %14, %15 : vector<1x512xf32>
    %cst_10 = arith.constant 9.99999974E-6 : f32
    %17 = vector.broadcast %cst_10 : f32 to vector<1x512xf32>
    %18 = arith.addf %16, %17 : vector<1x512xf32>
    %19 = math.rsqrt %18 : vector<1x512xf32>
    %20 = arith.mulf %4, %19 : vector<1x512xf32>
    %21 = arith.mulf %9, %20 : vector<1x512xf32>
    %22 = arith.subf %5, %21 : vector<1x512xf32>
    %23 = vector.broadcast %20 : vector<1x512xf32> to vector<8x512xf32>
    %24 = arith.mulf %3, %23 : vector<8x512xf32>
    %25 = vector.broadcast %22 : vector<1x512xf32> to vector<8x512xf32>
    %26 = arith.addf %24, %25 : vector<8x512xf32>
    %cst_11 = arith.constant 0.000000e+00 : f32
    %27 = vector.broadcast %cst_11 : f32 to vector<8x512xf32>
    %28 = arith.cmpf oge, %26, %27 : vector<8x512xf32>
    %cst_12 = arith.constant 0.00999999977 : f32
    %29 = vector.broadcast %cst_12 : f32 to vector<8x512xf32>
    %30 = arith.mulf %29, %26 : vector<8x512xf32>
    %31 = arith.select %28, %26, %30 : vector<8x512xi1>, vector<8x512xf32>
    %32 = arith.truncf %31 : vector<8x512xf32> to vector<8x512xbf16>
    %c0_13 = arith.constant 0 : index
    %c0_14 = arith.constant 0 : index
    %33 = vector.load %arg2[%c0_13, %c0_14] : memref<512x512xbf16, #tpu.memory_space<vmem>>, vector<512x512xbf16>
    %cst_15 = arith.constant dense<0.000000e+00> : vector<8x512xf32>
    %34 = tpu.matmul %32, %33, %cst_15 {dimension_numbers = #tpu.dot_dimension_numbers<[1], [0], [0], [1], [0, 0, 1, 1], [], []>} : vector<8x512xbf16>, vector<512x512xbf16>, vector<8x512xf32> -> vector<8x512xf32>
    %c2 = arith.constant 2 : index
    %c0_16 = arith.constant 0 : index
    %35 = vector.load %arg4[%c2, %c0_16] : memref<16x512xf32, #tpu.memory_space<vmem>>, vector<1x512xf32>
    %c3 = arith.constant 3 : index
    %c0_17 = arith.constant 0 : index
    %36 = vector.load %arg4[%c3, %c0_17] : memref<16x512xf32, #tpu.memory_space<vmem>>, vector<1x512xf32>
    %cst_18 = arith.constant dense<0.000000e+00> : vector<512xf32>
    %37 = vector.multi_reduction <add>, %34, %cst_18 [0] : vector<8x512xf32> to vector<512xf32>
    %38 = vector.shape_cast %37 : vector<512xf32> to vector<1x512xf32>
    %cst_19 = arith.constant 8.000000e+00 : f32
    %39 = vector.broadcast %cst_19 : f32 to vector<1x512xf32>
    %40 = arith.divf %38, %39 : vector<1x512xf32>
    %41 = arith.mulf %34, %34 : vector<8x512xf32>
    %cst_20 = arith.constant dense<0.000000e+00> : vector<512xf32>
    %42 = vector.multi_reduction <add>, %41, %cst_20 [0] : vector<8x512xf32> to vector<512xf32>
    %43 = vector.shape_cast %42 : vector<512xf32> to vector<1x512xf32>
    %cst_21 = arith.constant 8.000000e+00 : f32
    %44 = vector.broadcast %cst_21 : f32 to vector<1x512xf32>
    %45 = arith.divf %43, %44 : vector<1x512xf32>
    %46 = arith.mulf %40, %40 : vector<1x512xf32>
    %47 = arith.subf %45, %46 : vector<1x512xf32>
    %cst_22 = arith.constant 9.99999974E-6 : f32
    %48 = vector.broadcast %cst_22 : f32 to vector<1x512xf32>
    %49 = arith.addf %47, %48 : vector<1x512xf32>
    %50 = math.rsqrt %49 : vector<1x512xf32>
    %51 = arith.mulf %35, %50 : vector<1x512xf32>
    %52 = arith.mulf %40, %51 : vector<1x512xf32>
    %53 = arith.subf %36, %52 : vector<1x512xf32>
    %54 = vector.broadcast %51 : vector<1x512xf32> to vector<8x512xf32>
    %55 = arith.mulf %34, %54 : vector<8x512xf32>
    %56 = vector.broadcast %53 : vector<1x512xf32> to vector<8x512xf32>
    %57 = arith.addf %55, %56 : vector<8x512xf32>
    %cst_23 = arith.constant 0.000000e+00 : f32
    %58 = vector.broadcast %cst_23 : f32 to vector<8x512xf32>
    %59 = arith.cmpf oge, %57, %58 : vector<8x512xf32>
    %cst_24 = arith.constant 0.00999999977 : f32
    %60 = vector.broadcast %cst_24 : f32 to vector<8x512xf32>
    %61 = arith.mulf %60, %57 : vector<8x512xf32>
    %62 = arith.select %59, %57, %61 : vector<8x512xi1>, vector<8x512xf32>
    %63 = arith.truncf %62 : vector<8x512xf32> to vector<8x512xbf16>
    %c0_25 = arith.constant 0 : index
    %c0_26 = arith.constant 0 : index
    %64 = vector.load %arg3[%c0_25, %c0_26] : memref<512x512xbf16, #tpu.memory_space<vmem>>, vector<512x512xbf16>
    %cst_27 = arith.constant dense<0.000000e+00> : vector<8x512xf32>
    %65 = tpu.matmul %63, %64, %cst_27 {dimension_numbers = #tpu.dot_dimension_numbers<[1], [0], [0], [1], [0, 0, 1, 1], [], []>} : vector<8x512xbf16>, vector<512x512xbf16>, vector<8x512xf32> -> vector<8x512xf32>
    %c4 = arith.constant 4 : index
    %c0_28 = arith.constant 0 : index
    %66 = vector.load %arg4[%c4, %c0_28] : memref<16x512xf32, #tpu.memory_space<vmem>>, vector<1x512xf32>
    %c5 = arith.constant 5 : index
    %c0_29 = arith.constant 0 : index
    %67 = vector.load %arg4[%c5, %c0_29] : memref<16x512xf32, #tpu.memory_space<vmem>>, vector<1x512xf32>
    %cst_30 = arith.constant dense<0.000000e+00> : vector<512xf32>
    %68 = vector.multi_reduction <add>, %65, %cst_30 [0] : vector<8x512xf32> to vector<512xf32>
    %69 = vector.shape_cast %68 : vector<512xf32> to vector<1x512xf32>
    %cst_31 = arith.constant 8.000000e+00 : f32
    %70 = vector.broadcast %cst_31 : f32 to vector<1x512xf32>
    %71 = arith.divf %69, %70 : vector<1x512xf32>
    %72 = arith.mulf %65, %65 : vector<8x512xf32>
    %cst_32 = arith.constant dense<0.000000e+00> : vector<512xf32>
    %73 = vector.multi_reduction <add>, %72, %cst_32 [0] : vector<8x512xf32> to vector<512xf32>
    %74 = vector.shape_cast %73 : vector<512xf32> to vector<1x512xf32>
    %cst_33 = arith.constant 8.000000e+00 : f32
    %75 = vector.broadcast %cst_33 : f32 to vector<1x512xf32>
    %76 = arith.divf %74, %75 : vector<1x512xf32>
    %77 = arith.mulf %71, %71 : vector<1x512xf32>
    %78 = arith.subf %76, %77 : vector<1x512xf32>
    %cst_34 = arith.constant 9.99999974E-6 : f32
    %79 = vector.broadcast %cst_34 : f32 to vector<1x512xf32>
    %80 = arith.addf %78, %79 : vector<1x512xf32>
    %81 = math.rsqrt %80 : vector<1x512xf32>
    %82 = arith.mulf %66, %81 : vector<1x512xf32>
    %83 = arith.mulf %71, %82 : vector<1x512xf32>
    %84 = arith.subf %67, %83 : vector<1x512xf32>
    %85 = vector.broadcast %82 : vector<1x512xf32> to vector<8x512xf32>
    %86 = arith.mulf %65, %85 : vector<8x512xf32>
    %87 = vector.broadcast %84 : vector<1x512xf32> to vector<8x512xf32>
    %88 = arith.addf %86, %87 : vector<8x512xf32>
    %cst_35 = arith.constant 0.000000e+00 : f32
    %89 = vector.broadcast %cst_35 : f32 to vector<8x512xf32>
    %90 = arith.cmpf oge, %88, %89 : vector<8x512xf32>
    %cst_36 = arith.constant 0.00999999977 : f32
    %91 = vector.broadcast %cst_36 : f32 to vector<8x512xf32>
    %92 = arith.mulf %91, %88 : vector<8x512xf32>
    %93 = arith.select %90, %88, %92 : vector<8x512xi1>, vector<8x512xf32>
    %c8 = arith.constant 8 : index
    %c0_37 = arith.constant 0 : index
    %94 = vector.load %arg4[%c8, %c0_37] : memref<16x512xf32, #tpu.memory_space<vmem>>, vector<8x512xf32>
    %95 = arith.truncf %94 : vector<8x512xf32> to vector<8x512xbf16>
    %96 = arith.truncf %93 : vector<8x512xf32> to vector<8x512xbf16>
    %cst_38 = arith.constant dense<0.000000e+00> : vector<8x8xf32>
    %97 = tpu.matmul %96, %95, %cst_38 {dimension_numbers = #tpu.dot_dimension_numbers<[1], [1], [0], [0], [0, 0, 1, 0], [], []>} : vector<8x512xbf16>, vector<8x512xbf16>, vector<8x8xf32> -> vector<8x8xf32>
    %98 = vector.extract_strided_slice %97 {offsets = [0, 0], sizes = [8, 4], strides = [1, 1]} : vector<8x8xf32> to vector<8x4xf32>
    %c6 = arith.constant 6 : index
    %c0_39 = arith.constant 0 : index
    %99 = vector.load %arg4[%c6, %c0_39] : memref<16x512xf32, #tpu.memory_space<vmem>>, vector<1x4xf32>
    %100 = vector.broadcast %99 : vector<1x4xf32> to vector<8x4xf32>
    %101 = arith.addf %98, %100 : vector<8x4xf32>
    %c0_40 = arith.constant 0 : index
    %c0_41 = arith.constant 0 : index
    %102 = vector.load %arg5[%c0_40, %c0_41] : memref<8x4xf32, #tpu.memory_space<vmem>>, vector<8x4xf32>
    tpu.vector_store %arg5[%c0_40, %c0_41], %101 {strides = array<i32>} : memref<8x4xf32, #tpu.memory_space<vmem>>, vector<8x4xf32>,
    return
  }
}

</mosaic_0001>

<bundles_post_ra>
// kernel: tpu_custom_call.1
= control target key start
LH: loop header
LB: loop body
LE: loop exit
PB: predicated region body
PF: predicated region fallthrough
CT: control target
= control target key end

     0   :  { %10 = vsyncpa [#allocation3], 0  ;;  %s3904_s0 = inlined_call_operand.hbm [shape: f32[8,32], index: 0, kind: input, shape index: {}]   ;;  %s3905_s1 = inlined_call_operand.hbm [shape: bf16[32,512], index: 1, kind: input, shape index: {}]   ;;  %s3906_s2 = inlined_call_operand.hbm [shape: bf16[512,512], index: 2, kind: input, shape index: {}]   ;;  %s3907_s3 = inlined_call_operand.hbm [shape: bf16[512,512], index: 3, kind: input, shape index: {}]   ;;  %s3908_s4 = inlined_call_operand.hbm [shape: f32[16,512], index: 4, kind: input, shape index: {}]   ;;  %s3909_s5 = inlined_call_operand.vmem [shape: f32[8,4], index: 5, kind: output, shape index: {}]  }
   0x1   :  { %11 = vsyncpa [#allocation5], 0 }
   0x2   :  { %12 = vsyncpa [#allocation8], 0  ;;  %s3645_s18 = smov [#allocation4]   ;;  %s3529_s22 = scalar_lea.hbm %s3905_s1, 1024 }
   0x3   :  { %s28_s19 = sshll.u32 %s3645_s18, 4  ;;  %p3530_p0 = scmp.ne.s32.totalorder %s3905_s1, %s3529_s22  ;;  %s29_s19 = int_to_ptr.vmem [resolvable:$true] %s28_s19 }
   0x4   :  { %p3533_p1 = scmp.lt.u32.totalorder %s3529_s22, %s3905_s1 }
   0x6   :  { %p3535_p2 = pnand %p3533_p1, %p3530_p0 }
   0x8   :  { %3538 = shalt.err (!%p3535_p2)
}
   0x9   :  { %s3539_s27 = scalar_lea.vmem %s29_s19, 1024  ;;  %p3544_p4 = scmp.lt.s32.totalorder %s29_s19, %s29_s19 }
   0xa   :  { %p3540_p3 = scmp.ne.s32.totalorder %s29_s19, %s3539_s27  ;;  %p3545_p5 = scmp.lt.s32.totalorder %s3539_s27, %s3539_s27 }
   0xc   :  { %p3546_p6 = por %p3545_p5, %p3544_p4 }
   0xe   :  { %p3547_p7 = pnand %p3546_p6, %p3540_p3 }
  0x10   :  { %3550 = shalt.err (!%p3547_p7)
}
  0x11   :  { %s3646_s28 = smov 256   ;;  %s3647_s29 = smov 16  }
  0x12   :  { %34 = dma.hbm_to_vmem [thread:$0]  %s3905_s1, 1024, %s29_s19, [#allocation5], %s3646_s28, %s3646_s28, %s3647_s29  }
  0x13   :  { %s3648_s7 = smov [#allocation7]   ;;  %s3649_s9 = smov [#allocation2]  }
  0x14   :  { %s52_s8 = sshll.u32 %s3648_s7, 4  ;;  %s19_s10 = sshll.u32 %s3649_s9, 4  ;;  %s53_s8 = int_to_ptr.vmem [resolvable:$true] %s52_s8  ;;  %s20_s10 = int_to_ptr.vmem [resolvable:$true] %s19_s10 }
  0x15   :  { %s3551_s13 = scalar_lea.hbm %s3907_s3, 16384 }
  0x16   :  { %p3552_p8 = scmp.ne.s32.totalorder %s3907_s3, %s3551_s13  ;;  %p3555_p9 = scmp.lt.u32.totalorder %s3551_s13, %s3907_s3 }
  0x18   :  { %p3557_p10 = pnand %p3555_p9, %p3552_p8 }
  0x1a   :  { %3560 = shalt.err (!%p3557_p10)
}
  0x1b   :  { %s3561_s1 = scalar_lea.vmem %s53_s8, 16384  ;;  %p3566_p12 = scmp.lt.s32.totalorder %s53_s8, %s53_s8 }
  0x1c   :  { %p3562_p11 = scmp.ne.s32.totalorder %s53_s8, %s3561_s1  ;;  %p3567_p13 = scmp.lt.s32.totalorder %s3561_s1, %s3561_s1 }
  0x1e   :  { %p3568_p0 = por %p3567_p13, %p3566_p12 }
  0x20   :  { %p3569_p1 = pnand %p3568_p0, %p3562_p11 }
  0x22   :  { %3572 = shalt.err (!%p3569_p1)
}
  0x23   :  { %58 = dma.hbm_to_vmem [thread:$0]  %s3907_s3, 16384, %s53_s8, [#allocation8], %s3646_s28, %s3646_s28, %s3647_s29  }
  0x24   :  { %s3573_s22 = scalar_lea.hbm %s3904_s0, 128 }
  0x25   :  { %p3574_p2 = scmp.ne.s32.totalorder %s3904_s0, %s3573_s22  ;;  %p3577_p3 = scmp.lt.u32.totalorder %s3573_s22, %s3904_s0 }
  0x27   :  { %p3579_p4 = pnand %p3577_p3, %p3574_p2 }
  0x29   :  { %3582 = shalt.err (!%p3579_p4)
}
  0x2a   :  { %s3583_s27 = scalar_lea.vmem %s20_s10, 128  ;;  %p3588_p6 = scmp.lt.s32.totalorder %s20_s10, %s20_s10 }
  0x2b   :  { %p3584_p5 = scmp.ne.s32.totalorder %s20_s10, %s3583_s27  ;;  %p3589_p7 = scmp.lt.s32.totalorder %s3583_s27, %s3583_s27 }
  0x2d   :  { %p3590_p8 = por %p3589_p7, %p3588_p6 }
  0x2f   :  { %p3591_p9 = pnand %p3590_p8, %p3584_p5 }
  0x31   :  { %3594 = shalt.err (!%p3591_p9)
}
  0x32   :  { %22 = dma.hbm_to_vmem [thread:$0]  %s3904_s0, 128, %s20_s10, [#allocation3]  }
  0x33   :  { %s3650_s6 = smov [#allocation6]   ;;  %s3651_s8 = smov [#allocation9]  }
  0x34   :  { %s40_s7 = sshll.u32 %s3650_s6, 4  ;;  %s64_s9 = sshll.u32 %s3651_s8, 4  ;;  %s41_s7 = int_to_ptr.vmem [resolvable:$true] %s40_s7  ;;  %s65_s9 = int_to_ptr.vmem [resolvable:$true] %s64_s9 }
  0x35   :  { %s3595_s13 = scalar_lea.hbm %s3906_s2, 16384 }
  0x36   :  { %p3596_p10 = scmp.ne.s32.totalorder %s3906_s2, %s3595_s13  ;;  %p3599_p11 = scmp.lt.u32.totalorder %s3595_s13, %s3906_s2 }
  0x38   :  { %p3601_p12 = pnand %p3599_p11, %p3596_p10 }
  0x3a   :  { %3604 = shalt.err (!%p3601_p12)
}
  0x3b   :  { %s3605_s0 = scalar_lea.vmem %s41_s7, 16384  ;;  %p3610_p0 = scmp.lt.s32.totalorder %s41_s7, %s41_s7 }
  0x3c   :  { %p3606_p13 = scmp.ne.s32.totalorder %s41_s7, %s3605_s0  ;;  %p3611_p1 = scmp.lt.s32.totalorder %s3605_s0, %s3605_s0 }
  0x3e   :  { %p3612_p2 = por %p3611_p1, %p3610_p0 }
  0x40   :  { %p3613_p3 = pnand %p3612_p2, %p3606_p13 }
  0x42   :  { %3616 = shalt.err (!%p3613_p3)
}
  0x43   :  { %46 = dma.hbm_to_vmem [thread:$0]  %s3906_s2, 16384, %s41_s7, [#allocation5], %s3646_s28, %s3646_s28, %s3647_s29  }
  0x44   :  { %s3617_s20 = scalar_lea.hbm %s3908_s4, 1024 }
  0x45   :  { %p3618_p4 = scmp.ne.s32.totalorder %s3908_s4, %s3617_s20  ;;  %p3621_p5 = scmp.lt.u32.totalorder %s3617_s20, %s3908_s4 }
  0x47   :  { %p3623_p6 = pnand %p3621_p5, %p3618_p4 }
  0x49   :  { %3626 = shalt.err (!%p3623_p6)
}
  0x4a   :  { %s3627_s25 = scalar_lea.vmem %s65_s9, 1024  ;;  %p3632_p8 = scmp.lt.s32.totalorder %s65_s9, %s65_s9 }
  0x4b   :  { %p3628_p7 = scmp.ne.s32.totalorder %s65_s9, %s3627_s25  ;;  %p3633_p9 = scmp.lt.s32.totalorder %s3627_s25, %s3627_s25 }
  0x4d   :  { %p3634_p10 = por %p3633_p9, %p3632_p8 }
  0x4f   :  { %p3635_p11 = pnand %p3634_p10, %p3628_p7 }
  0x51   :  { %3638 = shalt.err (!%p3635_p11)
}
  0x52   :  { %s3652_s2 = smov 512   ;;  %s3653_s28 = smov 32  }
  0x53   :  { %70 = dma.hbm_to_vmem [thread:$0]  %s3908_s4, 1024, %s65_s9, [#allocation8], %s3652_s2, %s3652_s2, %s3653_s28  }
  0x54   :  { %3639 = dma.done.wait [#allocation3], 128  }
  0x55   :  { %3640 = vsyncadd [#allocation3], 4294967168 }
  0x56   :  { %3641 = dma.done.wait [#allocation5], 17408  }
  0x57   :  { %3642 = vsyncadd [#allocation5], 4294949888 }
  0x58   :  { %3643 = dma.done.wait [#allocation8], 17408  }
  0x59   :  { %3644 = vsyncadd [#allocation8], 4294949888  ;;  %v3654_v0 = vmov 0   ;;  %v3109_v1 = vld [vmem:[#allocation4 + $0x4] ss:$16 sps:$4 sm:$0xff]   ;;  %v87_v9 = vld [vmem:[#allocation2] sm:$0xff] }
  0x5a   :  { %173 = vmatprep.mubr.bf16.mxu0 %v3654_v0  ;;  %214 = vmatprep.mubr.bf16.mxu1 %v3654_v0  ;;  %v3111_v2 = vld [vmem:[#allocation4 + $0xc] ss:$16 sps:$4 sm:$0xff]   ;;  %v3113_v3 = vld [vmem:[#allocation4] ss:$16 sps:$4 sm:$0xff]   ;;  %v3114_v4 = vld [vmem:[#allocation4 + $0x8] ss:$16 sps:$4 sm:$0xff]   ;;  %v88_v10 = vpack.c.bf16 %v87_v9, %v87_v9 }
  0x5b   :  { %141 = vmatprep.subr.bf16.mxu0 %v3109_v1  ;;  %182 = vmatprep.subr.bf16.mxu1 %v3111_v2  ;;  %v3115_v5 = vld [vmem:[#allocation4 + $0x24] ss:$16 sps:$4 sm:$0xff]   ;;  %v3117_v6 = vld [vmem:[#allocation4 + $0x2c] ss:$16 sps:$4 sm:$0xff]   ;;  %v3119_v7 = vld [vmem:[#allocation4 + $0x20] ss:$16 sps:$4 sm:$0xff]  }
  0x5c   :  { %142 = vmatpush1.bf16.msra.mxu0 %v3113_v3  ;;  %183 = vmatpush1.bf16.msra.mxu1 %v3114_v4  ;;  %v3120_v8 = vld [vmem:[#allocation4 + $0x28] ss:$16 sps:$4 sm:$0xff]   ;;  %vm137_vm0 = vcmask 261120   ;;  %v3123_v11 = vld [vmem:[#allocation6 + $0x4] ss:$16 sps:$4 sm:$0xff]   ;;  %vm2807_vm13 = vcmask 31744  }
  0x5d   :  { %143 = vmatprep.subr.bf16.mxu0 %v3115_v5  ;;  %184 = vmatprep.subr.bf16.mxu1 %v3117_v6  ;;  %v3126_v12 = vld [vmem:[#allocation6 + $0xc] ss:$16 sps:$4 sm:$0xff]   ;;  %v3121_v13 = vld [vmem:[#allocation6] ss:$16 sps:$4 sm:$0xff]   ;;  %v3124_v14 = vld [vmem:[#allocation6 + $0x8] ss:$16 sps:$4 sm:$0xff]  }
  0x5e   :  { %v3129_v15 = vld [vmem:[#allocation6 + $0x24] ss:$16 sps:$4 sm:$0xff]   ;;  %v3132_v16 = vld [vmem:[#allocation6 + $0x2c] ss:$16 sps:$4 sm:$0xff]   ;;  %v3127_v17 = vld [vmem:[#allocation6 + $0x20] ss:$16 sps:$4 sm:$0xff]  }
  0x5f   :  { %v3130_v18 = vld [vmem:[#allocation6 + $0x28] ss:$16 sps:$4 sm:$0xff]   ;;  %v3135_v19 = vld [vmem:[#allocation6 + $0x44] ss:$16 sps:$4 sm:$0xff]   ;;  %v3138_v20 = vld [vmem:[#allocation6 + $0x4c] ss:$16 sps:$4 sm:$0xff]  }
  0x60   :  { %144 = vmatpush1.bf16.msra.mxu0 %v3119_v7  ;;  %185 = vmatpush1.bf16.msra.mxu1 %v3120_v8  ;;  %v3133_v21 = vld [vmem:[#allocation6 + $0x40] ss:$16 sps:$4 sm:$0xff]   ;;  %v3136_v22 = vld [vmem:[#allocation6 + $0x48] ss:$16 sps:$4 sm:$0xff]   ;;  %v3141_v23 = vld [vmem:[#allocation6 + $0x64] ss:$16 sps:$4 sm:$0xff]  }
  0x61   :  { %1201 = vmatprep.subr.bf16.mxu0 %v3123_v11  ;;  %1283 = vmatprep.subr.bf16.mxu1 %v3126_v12  ;;  %v3144_v24 = vld [vmem:[#allocation6 + $0x6c] ss:$16 sps:$4 sm:$0xff]   ;;  %v3139_v25 = vld [vmem:[#allocation6 + $0x60] ss:$16 sps:$4 sm:$0xff]   ;;  %v3142_v26 = vld [vmem:[#allocation6 + $0x68] ss:$16 sps:$4 sm:$0xff]  }
  0x62   :  { %v3147_v27 = vld [vmem:[#allocation6 + $0x84] ss:$16 sps:$4 sm:$0xff]   ;;  %v3150_v28 = vld [vmem:[#allocation6 + $0x8c] ss:$16 sps:$4 sm:$0xff]   ;;  %v3145_v29 = vld [vmem:[#allocation6 + $0x80] ss:$16 sps:$4 sm:$0xff]  }
  0x63   :  { %2824 = vmatmul.mubr.msk.bf16.vlgmr.msra.gmra.mrb[0].mxu0 %vm137_vm0, %v88_v10  ;;  %2825 = vmatmul.mubr.msk.bf16.vlgmr.msra.gmra.mrb[0].mxu1 %vm137_vm0, %v88_v10  ;;  %v3148_v30 = vld [vmem:[#allocation6 + $0x88] ss:$16 sps:$4 sm:$0xff]   ;;  %v3151_v31 = vld [vmem:[#allocation6 + $0xa0] ss:$16 sps:$4 sm:$0xff]   ;;  %v3153_v32 = vld [vmem:[#allocation6 + $0xa4] ss:$16 sps:$4 sm:$0xff]  }
  0x64   :  { %1202 = vmatpush1.bf16.msra.mxu0 %v3121_v13  ;;  %1284 = vmatpush1.bf16.msra.mxu1 %v3124_v14  ;;  %v3154_v33 = vld [vmem:[#allocation6 + $0xa8] ss:$16 sps:$4 sm:$0xff]   ;;  %v3156_v34 = vld [vmem:[#allocation6 + $0xac] ss:$16 sps:$4 sm:$0xff]   ;;  %v3159_v35 = vld [vmem:[#allocation6 + $0xc4] ss:$16 sps:$4 sm:$0xff]  }
  0x65   :  { %1203 = vmatprep.subr.bf16.mxu0 %v3129_v15  ;;  %1285 = vmatprep.subr.bf16.mxu1 %v3132_v16  ;;  %v3162_v36 = vld [vmem:[#allocation6 + $0xcc] ss:$16 sps:$4 sm:$0xff]   ;;  %v3157_v37 = vld [vmem:[#allocation6 + $0xc0] ss:$16 sps:$4 sm:$0xff]   ;;  %v3160_v38 = vld [vmem:[#allocation6 + $0xc8] ss:$16 sps:$4 sm:$0xff]  }
  0x66   :  { %v3165_v39 = vld [vmem:[#allocation6 + $0xe4] ss:$16 sps:$4 sm:$0xff]   ;;  %v3168_v40 = vld [vmem:[#allocation6 + $0xec] ss:$16 sps:$4 sm:$0xff]   ;;  %v3163_v41 = vld [vmem:[#allocation6 + $0xe0] ss:$16 sps:$4 sm:$0xff]  }
  0x67   :  { %v3166_v42 = vld [vmem:[#allocation6 + $0xe8] ss:$16 sps:$4 sm:$0xff]   ;;  %v3171_v43 = vld [vmem:[#allocation6 + $0x104] ss:$16 sps:$4 sm:$0xff]   ;;  %v3174_v44 = vld [vmem:[#allocation6 + $0x10c] ss:$16 sps:$4 sm:$0xff]  }
  0x68   :  { %1204 = vmatpush1.bf16.msra.mxu0 %v3127_v17  ;;  %1286 = vmatpush1.bf16.msra.mxu1 %v3130_v18  ;;  %v3169_v45 = vld [vmem:[#allocation6 + $0x100] ss:$16 sps:$4 sm:$0xff]   ;;  %v3172_v46 = vld [vmem:[#allocation6 + $0x108] ss:$16 sps:$4 sm:$0xff]   ;;  %v3177_v47 = vld [vmem:[#allocation6 + $0x124] ss:$16 sps:$4 sm:$0xff]  }
  0x69   :  { %1205 = vmatprep.subr.bf16.mxu0 %v3135_v19  ;;  %1287 = vmatprep.subr.bf16.mxu1 %v3138_v20  ;;  %v3180_v48 = vld [vmem:[#allocation6 + $0x12c] ss:$16 sps:$4 sm:$0xff]   ;;  %v3175_v49 = vld [vmem:[#allocation6 + $0x120] ss:$16 sps:$4 sm:$0xff]   ;;  %v3178_v50 = vld [vmem:[#allocation6 + $0x128] ss:$16 sps:$4 sm:$0xff]  }
  0x6a   :  { %v3183_v51 = vld [vmem:[#allocation6 + $0x144] ss:$16 sps:$4 sm:$0xff]   ;;  %v3181_v52 = vld [vmem:[#allocation6 + $0x140] ss:$16 sps:$4 sm:$0xff]   ;;  %v3184_v53 = vld [vmem:[#allocation6 + $0x148] ss:$16 sps:$4 sm:$0xff]  }
  0x6b   :  { %v3186_v54 = vld [vmem:[#allocation6 + $0x14c] ss:$16 sps:$4 sm:$0xff]   ;;  %v3189_v55 = vld [vmem:[#allocation6 + $0x164] ss:$16 sps:$4 sm:$0xff]   ;;  %v3187_v57 = vld [vmem:[#allocation6 + $0x160] ss:$16 sps:$4 sm:$0xff]  }
  0x6c   :  { %1206 = vmatpush1.bf16.msra.mxu0 %v3133_v21  ;;  %1288 = vmatpush1.bf16.msra.mxu1 %v3136_v22  ;;  %v3192_v56 = vld [vmem:[#allocation6 + $0x16c] ss:$16 sps:$4 sm:$0xff]   ;;  %v3190_v58 = vld [vmem:[#allocation6 + $0x168] ss:$16 sps:$4 sm:$0xff]   ;;  %v3195_v59 = vld [vmem:[#allocation6 + $0x184] ss:$16 sps:$4 sm:$0xff]  }
  0x6d   :  { %1207 = vmatprep.subr.bf16.mxu0 %v3141_v23  ;;  %1289 = vmatprep.subr.bf16.mxu1 %v3144_v24  ;;  %v3198_v60 = vld [vmem:[#allocation6 + $0x18c] ss:$16 sps:$4 sm:$0xff]   ;;  %v3193_v61 = vld [vmem:[#allocation6 + $0x180] ss:$16 sps:$4 sm:$0xff]   ;;  %v3196_v62 = vld [vmem:[#allocation6 + $0x188] ss:$16 sps:$4 sm:$0xff]  }
  0x6e   :  { %v3201_v63 = vld [vmem:[#allocation6 + $0x1a4] ss:$16 sps:$4 sm:$0xff]   ;;  %v3204_v0 = vld [vmem:[#allocation6 + $0x1ac] ss:$16 sps:$4 sm:$0xff]   ;;  %v3199_v1 = vld [vmem:[#allocation6 + $0x1a0] ss:$16 sps:$4 sm:$0xff]  }
  0x6f   :  { %v3202_v2 = vld [vmem:[#allocation6 + $0x1a8] ss:$16 sps:$4 sm:$0xff]   ;;  %v3207_v3 = vld [vmem:[#allocation6 + $0x1c4] ss:$16 sps:$4 sm:$0xff]   ;;  %v3210_v4 = vld [vmem:[#allocation6 + $0x1cc] ss:$16 sps:$4 sm:$0xff]  }
  0x70   :  { %1208 = vmatpush1.bf16.msra.mxu0 %v3139_v25  ;;  %1290 = vmatpush1.bf16.msra.mxu1 %v3142_v26  ;;  %v3205_v5 = vld [vmem:[#allocation6 + $0x1c0] ss:$16 sps:$4 sm:$0xff]   ;;  %v3208_v6 = vld [vmem:[#allocation6 + $0x1c8] ss:$16 sps:$4 sm:$0xff]   ;;  %v3213_v7 = vld [vmem:[#allocation6 + $0x1e4] ss:$16 sps:$4 sm:$0xff]  }
  0x71   :  { %1209 = vmatprep.subr.bf16.mxu0 %v3147_v27  ;;  %1291 = vmatprep.subr.bf16.mxu1 %v3150_v28  ;;  %v3216_v8 = vld [vmem:[#allocation6 + $0x1ec] ss:$16 sps:$4 sm:$0xff]   ;;  %v3211_v9 = vld [vmem:[#allocation6 + $0x1e0] ss:$16 sps:$4 sm:$0xff]   ;;  %v3214_v10 = vld [vmem:[#allocation6 + $0x1e8] ss:$16 sps:$4 sm:$0xff]  }
  0x72   :  { %v3219_v11 = vld [vmem:[#allocation6 + $0x204] ss:$16 sps:$4 sm:$0xff]   ;;  %v3222_v12 = vld [vmem:[#allocation6 + $0x20c] ss:$16 sps:$4 sm:$0xff]  }
  0x74   :  { %1210 = vmatpush1.bf16.msra.mxu0 %v3145_v29  ;;  %1292 = vmatpush1.bf16.msra.mxu1 %v3148_v30 }
  0x75   :  { %1211 = vmatprep.subr.bf16.mxu0 %v3153_v32  ;;  %1293 = vmatprep.subr.bf16.mxu1 %v3156_v34 }
  0x78   :  { %1212 = vmatpush1.bf16.msra.mxu0 %v3151_v31  ;;  %1294 = vmatpush1.bf16.msra.mxu1 %v3154_v33 }
  0x79   :  { %1213 = vmatprep.subr.bf16.mxu0 %v3159_v35  ;;  %1295 = vmatprep.subr.bf16.mxu1 %v3162_v36 }
  0x7c   :  { %1214 = vmatpush1.bf16.msra.mxu0 %v3157_v37  ;;  %1296 = vmatpush1.bf16.msra.mxu1 %v3160_v38 }
  0x7d   :  { %1215 = vmatprep.subr.bf16.mxu0 %v3165_v39  ;;  %1297 = vmatprep.subr.bf16.mxu1 %v3168_v40 }
  0x80   :  { %1216 = vmatpush1.bf16.msra.mxu0 %v3163_v41  ;;  %1298 = vmatpush1.bf16.msra.mxu1 %v3166_v42 }
  0x81   :  { %1217 = vmatprep.subr.bf16.mxu0 %v3171_v43  ;;  %1299 = vmatprep.subr.bf16.mxu1 %v3174_v44 }
  0x84   :  { %1218 = vmatpush1.bf16.msra.mxu0 %v3169_v45  ;;  %1300 = vmatpush1.bf16.msra.mxu1 %v3172_v46 }
  0x85   :  { %1219 = vmatprep.subr.bf16.mxu0 %v3177_v47  ;;  %1301 = vmatprep.subr.bf16.mxu1 %v3180_v48 }
  0x88   :  { %1220 = vmatpush1.bf16.msra.mxu0 %v3175_v49  ;;  %1302 = vmatpush1.bf16.msra.mxu1 %v3178_v50 }
  0x89   :  { %1221 = vmatprep.subr.bf16.mxu0 %v3183_v51  ;;  %1303 = vmatprep.subr.bf16.mxu1 %v3186_v54 }
  0x8c   :  { %1222 = vmatpush1.bf16.msra.mxu0 %v3181_v52  ;;  %1304 = vmatpush1.bf16.msra.mxu1 %v3184_v53 }
  0x8d   :  { %1223 = vmatprep.subr.bf16.mxu0 %v3189_v55  ;;  %1305 = vmatprep.subr.bf16.mxu1 %v3192_v56 }
  0x90   :  { %1224 = vmatpush1.bf16.msra.mxu0 %v3187_v57  ;;  %1306 = vmatpush1.bf16.msra.mxu1 %v3190_v58 }
  0x91   :  { %1225 = vmatprep.subr.bf16.mxu0 %v3195_v59  ;;  %1307 = vmatprep.subr.bf16.mxu1 %v3198_v60 }
  0x94   :  { %1226 = vmatpush1.bf16.msra.mxu0 %v3193_v61  ;;  %1308 = vmatpush1.bf16.msra.mxu1 %v3196_v62 }
  0x95   :  { %1227 = vmatprep.subr.bf16.mxu0 %v3201_v63  ;;  %1309 = vmatprep.subr.bf16.mxu1 %v3204_v0 }
  0x98   :  { %1228 = vmatpush1.bf16.msra.mxu0 %v3199_v1  ;;  %1310 = vmatpush1.bf16.msra.mxu1 %v3202_v2 }
  0x99   :  { %1229 = vmatprep.subr.bf16.mxu0 %v3207_v3  ;;  %1311 = vmatprep.subr.bf16.mxu1 %v3210_v4 }
  0x9c   :  { %1230 = vmatpush1.bf16.msra.mxu0 %v3205_v5  ;;  %1312 = vmatpush1.bf16.msra.mxu1 %v3208_v6 }
  0x9d   :  { %1231 = vmatprep.subr.bf16.mxu0 %v3213_v7  ;;  %1313 = vmatprep.subr.bf16.mxu1 %v3216_v8 }
  0xa0   :  { %1232 = vmatpush1.bf16.msra.mxu0 %v3211_v9  ;;  %1314 = vmatpush1.bf16.msra.mxu1 %v3214_v10 }
  0xa1   :  { %1242 = vmatprep.subr.bf16.mxu0 %v3219_v11  ;;  %1324 = vmatprep.subr.bf16.mxu1 %v3222_v12 }
 0x136   :  { %v3755_v13 = vpop.f32.mrb[0].mxu0  ;;  %v3757_v14 = vpop.f32.mrb[0].mxu1 }
 0x137   :  { %v226_v15 = vrot.slane %v3755_v13, 4  ;;  %v255_v16 = vmul.f32 %v3755_v13, %v3755_v13  ;;  %v238_v17 = vrot.slane %v3757_v14, 4  ;;  %v257_v18 = vmul.f32 %v3757_v14, %v3757_v14  ;;  %v3765_v19 = vpop.f32.mrb[1].mxu0  ;;  %v3767_v20 = vpop.f32.mrb[1].mxu1 }
 0x138   :  { %v232_v21 = vrot.slane %v3765_v19, 4  ;;  %v256_v22 = vmul.f32 %v3765_v19, %v3765_v19  ;;  %v244_v23 = vrot.slane %v3767_v20, 4  ;;  %v258_v24 = vmul.f32 %v3767_v20, %v3767_v20  ;;  %v179_v25 = vpop.f32.mrb[2].mxu0  ;;  %v220_v26 = vpop.f32.mrb[2].mxu1 }
 0x139   :  { %v227_v27 = vadd.f32 %v226_v15, %v3755_v13  ;;  %v259_v28 = vrot.slane %v255_v16, 4  ;;  %v239_v29 = vadd.f32 %v238_v17, %v3757_v14  ;;  %v271_v30 = vrot.slane %v257_v18, 4  ;;  %v180_v31 = vpop.f32.mrb[3].mxu0  ;;  %v221_v32 = vpop.f32.mrb[3].mxu1 }
 0x13a   :  { %v233_v33 = vadd.f32 %v232_v21, %v3765_v19  ;;  %v265_v34 = vrot.slane %v256_v22, 4  ;;  %v245_v35 = vadd.f32 %v244_v23, %v3767_v20  ;;  %v277_v36 = vrot.slane %v258_v24, 4 }
 0x13b   :  { %v228_v37 = vrot.slane %v227_v27, 2  ;;  %v260_v38 = vadd.f32 %v259_v28, %v255_v16  ;;  %v240_v39 = vrot.slane %v239_v29, 2  ;;  %v272_v40 = vadd.f32 %v271_v30, %v257_v18 }
 0x13c   :  { %v234_v41 = vrot.slane %v233_v33, 2  ;;  %v266_v42 = vadd.f32 %v265_v34, %v256_v22  ;;  %v246_v43 = vrot.slane %v245_v35, 2  ;;  %v278_v44 = vadd.f32 %v277_v36, %v258_v24 }
 0x13d   :  { %v229_v45 = vadd.f32 %v228_v37, %v227_v27  ;;  %v261_v46 = vrot.slane %v260_v38, 2  ;;  %v241_v47 = vadd.f32 %v240_v39, %v239_v29  ;;  %v273_v48 = vrot.slane %v272_v40, 2 }
 0x13e   :  { %v235_v49 = vadd.f32 %v234_v41, %v233_v33  ;;  %v267_v50 = vrot.slane %v266_v42, 2  ;;  %v247_v51 = vadd.f32 %v246_v43, %v245_v35  ;;  %v279_v52 = vrot.slane %v278_v44, 2 }
 0x13f   :  { %v230_v53 = vrot.slane %v229_v45, 1  ;;  %v262_v54 = vadd.f32 %v261_v46, %v260_v38  ;;  %v242_v55 = vrot.slane %v241_v47, 1  ;;  %v274_v56 = vadd.f32 %v273_v48, %v272_v40  ;;  %v223_v48 = vld [vmem:[#allocation9] ss:$8 sm:$0xf] }
 0x140   :  { %v236_v57 = vrot.slane %v235_v49, 1  ;;  %v268_v58 = vadd.f32 %v267_v50, %v266_v42  ;;  %v248_v59 = vrot.slane %v247_v51, 1  ;;  %v280_v60 = vadd.f32 %v279_v52, %v278_v44 }
 0x141   :  { %v231_v61 = vadd.f32 %v230_v53, %v229_v45  ;;  %v263_v62 = vrot.slane %v262_v54, 1  ;;  %v243_v63 = vadd.f32 %v242_v55, %v241_v47  ;;  %v275_v0 = vrot.slane %v274_v56, 1 }
 0x142   :  { %v237_v1 = vadd.f32 %v236_v57, %v235_v49  ;;  %v269_v2 = vrot.slane %v268_v58, 1  ;;  %v249_v3 = vadd.f32 %v248_v59, %v247_v51  ;;  %v281_v4 = vrot.slane %v280_v60, 1 }
 0x143   :  { %v251_v5 = vmul.f32 0.125, %v231_v61  ;;  %v264_v6 = vadd.f32 %v263_v62, %v262_v54  ;;  %v253_v7 = vmul.f32 0.125, %v243_v63  ;;  %v276_v8 = vadd.f32 %v275_v0, %v274_v56 }
 0x144   :  { %v252_v9 = vmul.f32 0.125, %v237_v1  ;;  %v270_v10 = vadd.f32 %v269_v2, %v268_v58  ;;  %v254_v11 = vmul.f32 0.125, %v249_v3  ;;  %v282_v12 = vadd.f32 %v281_v4, %v280_v60 }
 0x145   :  { %v283_v15 = vmul.f32 0.125, %v264_v6  ;;  %v287_v16 = vmul.f32 %v251_v5, %v251_v5  ;;  %v285_v17 = vmul.f32 0.125, %v276_v8  ;;  %v289_v18 = vmul.f32 %v253_v7, %v253_v7 }
 0x146   :  { %v284_v21 = vmul.f32 0.125, %v270_v10  ;;  %v288_v22 = vmul.f32 %v252_v9, %v252_v9  ;;  %v286_v23 = vmul.f32 0.125, %v282_v12  ;;  %v290_v24 = vmul.f32 %v254_v11, %v254_v11  ;;  %v225_v12 = vld [vmem:[#allocation9 + $0x1] ss:$8 sm:$0xf] }
 0x147   :  { %v291_v25 = vsub.f32 %v283_v15, %v287_v16  ;;  %v293_v26 = vsub.f32 %v285_v17, %v289_v18  ;;  %v3655_v33 = vmov 1966171168   ;;  %v312_v35 = vlaneseq }
 0x148   :  { %v292_v27 = vsub.f32 %v284_v21, %v288_v22  ;;  %v294_v28 = vsub.f32 %v286_v23, %v290_v24  ;;  %v310_v34 = vunpack.c.l.s4 %v3655_v33  ;;  %v3226_v33 = vld [vmem:[#allocation6 + $0x228] ss:$16 sps:$4 sm:$0xff]  }
 0x149   :  { %v295_v29 = vadd.f32 1e-05, %v291_v25  ;;  %v297_v30 = vadd.f32 1e-05, %v293_v26  ;;  %v313_v37 = vshrl.u32 %v312_v35, 7 }
 0x14a   :  { %v296_v31 = vadd.f32 1e-05, %v292_v27  ;;  %v298_v32 = vadd.f32 1e-05, %v294_v28  ;;  %v311_v36 = vunpack.c.0.s8 %v310_v34  ;;  %v3217_v25 = vld [vmem:[#allocation6 + $0x200] ss:$16 sps:$4 sm:$0xff]  }
 0x14b   :  { %3505 = vrsqrt.f32 %v295_v29  ;;  %v3783_v49 = vsub.s32 0, %v313_v37  ;;  %v3786_v51 = vsub.s32 1, %v313_v37  ;;  %v3788_v52 = vsub.s32 2, %v313_v37  ;;  %v3220_v26 = vld [vmem:[#allocation6 + $0x208] ss:$16 sps:$4 sm:$0xff]  }
 0x14c   :  { %3507 = vrsqrt.f32 %v297_v30  ;;  %v3779_v40 = vsub.s32 %v311_v36, %v313_v37  ;;  %v3790_v53 = vsub.s32 3, %v313_v37  ;;  %v3225_v29 = vld [vmem:[#allocation6 + $0x224] ss:$16 sps:$4 sm:$0xff]   ;;  %v3228_v30 = vld [vmem:[#allocation6 + $0x22c] ss:$16 sps:$4 sm:$0xff]  }
 0x14d   :  { %3509 = vrsqrt.f32 %v296_v31  ;;  %v3231_v34 = vld [vmem:[#allocation6 + $0x244] ss:$16 sps:$4 sm:$0xff]   ;;  %v3234_v35 = vld [vmem:[#allocation6 + $0x24c] ss:$16 sps:$4 sm:$0xff]   ;;  %v3229_v36 = vld [vmem:[#allocation6 + $0x240] ss:$16 sps:$4 sm:$0xff]  }
 0x14e   :  { %3511 = vrsqrt.f32 %v298_v32  ;;  %v3223_v32 = vld [vmem:[#allocation6 + $0x220] ss:$16 sps:$4 sm:$0xff]   ;;  %v3232_v37 = vld [vmem:[#allocation6 + $0x248] ss:$16 sps:$4 sm:$0xff]  }
 0x155   :  { %v3506_v38 = vpop.eup %3505 }
 0x156   :  { %v3508_v39 = vpop.eup %3507 }
 0x157   :  { %v3510_v41 = vpop.eup %3509 }
 0x158   :  { %v3512_v42 = vpop.eup %3511  ;;  %v307_v43 = vcombine.low %v3506_v38, %v3510_v41  ;;  %v3237_v38 = vld [vmem:[#allocation6 + $0x264] ss:$16 sps:$4 sm:$0xff]   ;;  %v3235_v41 = vld [vmem:[#allocation6 + $0x260] ss:$16 sps:$4 sm:$0xff]  }
 0x159   :  { %v308_v44 = vcombine.low %v3508_v39, %v3512_v42  ;;  %v3240_v39 = vld [vmem:[#allocation6 + $0x26c] ss:$16 sps:$4 sm:$0xff]   ;;  %v3238_v42 = vld [vmem:[#allocation6 + $0x268] ss:$16 sps:$4 sm:$0xff]  }
 0x15a   :  { %v315_v45 = vrot.slane %v307_v43, %v3779_v40  ;;  %v3243_v43 = vld [vmem:[#allocation6 + $0x284] ss:$16 sps:$4 sm:$0xff]  }
 0x15b   :  { %v322_v46 = vrot.slane %v308_v44, %v3779_v40  ;;  %v3246_v44 = vld [vmem:[#allocation6 + $0x28c] ss:$16 sps:$4 sm:$0xff]  }
 0x15d   :  { %v323_v47 = vcombine.low %v315_v45, %v322_v46  ;;  %v3241_v45 = vld [vmem:[#allocation6 + $0x280] ss:$16 sps:$4 sm:$0xff]   ;;  %v3244_v46 = vld [vmem:[#allocation6 + $0x288] ss:$16 sps:$4 sm:$0xff]  }
 0x15f   :  { %v330_v50 = vrot.slane %v323_v47, %v3779_v40  ;;  %v3249_v47 = vld [vmem:[#allocation6 + $0x2a4] ss:$16 sps:$4 sm:$0xff]  }
 0x161   :  { %v332_v54 = vmul.f32 %v330_v50, %v223_v48  ;;  %v3252_v48 = vld [vmem:[#allocation6 + $0x2ac] ss:$16 sps:$4 sm:$0xff]   ;;  %v3247_v50 = vld [vmem:[#allocation6 + $0x2a0] ss:$16 sps:$4 sm:$0xff]  }
 0x163   :  { %v337_v55 = vrot.slane %v332_v54, %v3783_v49  ;;  %v341_v56 = vrot.slane %v332_v54, %v3786_v51  ;;  %v345_v57 = vrot.slane %v332_v54, %v3788_v52  ;;  %v349_v58 = vrot.slane %v332_v54, %v3790_v53  ;;  %v3250_v54 = vld [vmem:[#allocation6 + $0x2a8] ss:$16 sps:$4 sm:$0xff]  }
 0x165   :  { %v354_v59 = vmul.f32 %v337_v55, %v251_v5  ;;  %v355_v60 = vmul.f32 %v341_v56, %v252_v9  ;;  %v356_v61 = vmul.f32 %v345_v57, %v253_v7  ;;  %v357_v62 = vmul.f32 %v349_v58, %v254_v11 }
 0x166   :  { %v391_v63 = vmul.f32 %v349_v58, %v3767_v20  ;;  %v389_v0 = vmul.f32 %v341_v56, %v3765_v19  ;;  %v388_v1 = vmul.f32 %v337_v55, %v3755_v13  ;;  %v390_v2 = vmul.f32 %v345_v57, %v3757_v14  ;;  %v3255_v55 = vld [vmem:[#allocation6 + $0x2c4] ss:$16 sps:$4 sm:$0xff]   ;;  %v3258_v56 = vld [vmem:[#allocation6 + $0x2cc] ss:$16 sps:$4 sm:$0xff]   ;;  %v3253_v57 = vld [vmem:[#allocation6 + $0x2c0] ss:$16 sps:$4 sm:$0xff]  }
 0x167   :  { %v362_v3 = vcombine.low %v354_v59, %v355_v60  ;;  %v363_v4 = vcombine.low %v356_v61, %v357_v62  ;;  %v3256_v58 = vld [vmem:[#allocation6 + $0x2c8] ss:$16 sps:$4 sm:$0xff]   ;;  %v3261_v59 = vld [vmem:[#allocation6 + $0x2e4] ss:$16 sps:$4 sm:$0xff]   ;;  %v3264_v60 = vld [vmem:[#allocation6 + $0x2ec] ss:$16 sps:$4 sm:$0xff]  }
 0x168   :  { %v3259_v61 = vld [vmem:[#allocation6 + $0x2e0] ss:$16 sps:$4 sm:$0xff]   ;;  %v3262_v62 = vld [vmem:[#allocation6 + $0x2e8] ss:$16 sps:$4 sm:$0xff]  }
 0x169   :  { %v370_v6 = vrot.slane %v362_v3, %v3779_v40  ;;  %v377_v8 = vrot.slane %v363_v4, %v3779_v40  ;;  %v3273_v3 = vld [vmem:[#allocation6 + $0x324] ss:$16 sps:$4 sm:$0xff]   ;;  %v3276_v4 = vld [vmem:[#allocation6 + $0x32c] ss:$16 sps:$4 sm:$0xff]  }
 0x16b   :  { %v378_v10 = vcombine.low %v370_v6, %v377_v8  ;;  %v3271_v6 = vld [vmem:[#allocation6 + $0x320] ss:$16 sps:$4 sm:$0xff]   ;;  %v3274_v8 = vld [vmem:[#allocation6 + $0x328] ss:$16 sps:$4 sm:$0xff]  }
 0x16d   :  { %v385_v5 = vrot.slane %v378_v10, %v3779_v40  ;;  %v3279_v10 = vld [vmem:[#allocation6 + $0x344] ss:$16 sps:$4 sm:$0xff]  }
 0x16f   :  { %v387_v7 = vsub.f32 %v225_v12, %v385_v5  ;;  %v3282_v12 = vld [vmem:[#allocation6 + $0x34c] ss:$16 sps:$4 sm:$0xff]   ;;  %v3277_v5 = vld [vmem:[#allocation6 + $0x340] ss:$16 sps:$4 sm:$0xff]  }
 0x171   :  { %v408_v9 = vrot.slane %v387_v7, %v3790_v53  ;;  %v400_v20 = vrot.slane %v387_v7, %v3786_v51  ;;  %v396_v19 = vrot.slane %v387_v7, %v3783_v49  ;;  %v404_v13 = vrot.slane %v387_v7, %v3788_v52  ;;  %v3280_v7 = vld [vmem:[#allocation6 + $0x348] ss:$16 sps:$4 sm:$0xff]  }
 0x173   :  { %v416_v14 = vadd.f32 %v408_v9, %v391_v63  ;;  %v414_v11 = vadd.f32 %v400_v20, %v389_v0  ;;  %v413_v15 = vadd.f32 %v396_v19, %v388_v1  ;;  %v3807_v16 = vadd.f32 %v404_v13, %v390_v2  ;;  %v3267_v63 = vld [vmem:[#allocation6 + $0x304] ss:$16 sps:$4 sm:$0xff]   ;;  %v3270_v0 = vld [vmem:[#allocation6 + $0x30c] ss:$16 sps:$4 sm:$0xff]   ;;  %v3265_v1 = vld [vmem:[#allocation6 + $0x300] ss:$16 sps:$4 sm:$0xff]  }
 0x174   :  { %v3268_v2 = vld [vmem:[#allocation6 + $0x308] ss:$16 sps:$4 sm:$0xff]   ;;  %v3285_v9 = vld [vmem:[#allocation6 + $0x364] ss:$16 sps:$4 sm:$0xff]   ;;  %v3288_v20 = vld [vmem:[#allocation6 + $0x36c] ss:$16 sps:$4 sm:$0xff]  }
 0x175   :  { %vm418_vm1 = vcmp.ge.f32.partialorder %v414_v11, 0.0  ;;  %v422_v17 = vmul.f32 0.01, %v414_v11  ;;  %vm417_vm2 = vcmp.ge.f32.partialorder %v413_v15, 0.0  ;;  %v421_v18 = vmul.f32 0.01, %v413_v15 }
 0x176   :  { %vm420_vm3 = vcmp.ge.f32.partialorder %v416_v14, 0.0  ;;  %v424_v21 = vmul.f32 0.01, %v416_v14  ;;  %v3283_v19 = vld [vmem:[#allocation6 + $0x360] ss:$16 sps:$4 sm:$0xff]   ;;  %vm419_vm4 = vcmp.ge.f32.partialorder %v3807_v16, 0.0 }
 0x177   :  { %v426_v22 = vsel %vm418_vm1, %v414_v11, %v422_v17  ;;  %v425_v23 = vsel %vm417_vm2, %v413_v15, %v421_v18  ;;  %v3286_v13 = vld [vmem:[#allocation6 + $0x368] ss:$16 sps:$4 sm:$0xff]   ;;  %v3294_v11 = vld [vmem:[#allocation6 + $0x38c] ss:$16 sps:$4 sm:$0xff]   ;;  %v3289_v15 = vld [vmem:[#allocation6 + $0x380] ss:$16 sps:$4 sm:$0xff]  }
 0x178   :  { %v430_v24 = vpack.c.bf16 %v426_v22, %v426_v22  ;;  %v429_v27 = vpack.c.bf16 %v425_v23, %v425_v23  ;;  %v428_v28 = vsel %vm420_vm3, %v416_v14, %v424_v21  ;;  %v3291_v14 = vld [vmem:[#allocation6 + $0x384] ss:$16 sps:$4 sm:$0xff]   ;;  %v3292_v17 = vld [vmem:[#allocation6 + $0x388] ss:$16 sps:$4 sm:$0xff]   ;;  %v3300_v21 = vld [vmem:[#allocation6 + $0x3ac] ss:$16 sps:$4 sm:$0xff]  }
 0x179   :  { %v432_v31 = vpack.c.bf16 %v428_v28, %v428_v28  ;;  %v3297_v18 = vld [vmem:[#allocation6 + $0x3a4] ss:$16 sps:$4 sm:$0xff]   ;;  %v3295_v22 = vld [vmem:[#allocation6 + $0x3a0] ss:$16 sps:$4 sm:$0xff]   ;;  %v3298_v23 = vld [vmem:[#allocation6 + $0x3a8] ss:$16 sps:$4 sm:$0xff]  }
 0x17a   :  { %1233 = vmatprep.mubr.bf16.mxu0 %v430_v24  ;;  %1315 = vmatprep.mubr.bf16.mxu1 %v430_v24  ;;  %v3303_v24 = vld [vmem:[#allocation6 + $0x3c4] ss:$16 sps:$4 sm:$0xff]  }
 0x17b   :  { %1234 = vmatmul.mubr.bf16.vlgmr.msra.gmra.mrb[4].mxu0 %v429_v27  ;;  %1316 = vmatmul.mubr.bf16.vlgmr.msra.gmra.mrb[4].mxu1 %v429_v27  ;;  %v3304_v27 = vld [vmem:[#allocation6 + $0x3c8] ss:$16 sps:$4 sm:$0xff]   ;;  %v3309_v28 = vld [vmem:[#allocation6 + $0x3e4] ss:$16 sps:$4 sm:$0xff]  }
 0x17c   :  { %1243 = vmatpush1.bf16.msra.mxu0 %v3217_v25  ;;  %1325 = vmatpush1.bf16.msra.mxu1 %v3220_v26  ;;  %v3306_v25 = vld [vmem:[#allocation6 + $0x3cc] ss:$16 sps:$4 sm:$0xff]   ;;  %v3301_v26 = vld [vmem:[#allocation6 + $0x3c0] ss:$16 sps:$4 sm:$0xff]  }
 0x17d   :  { %1274 = vmatprep.mubr.bf16.mxu0 %v432_v31  ;;  %1356 = vmatprep.mubr.bf16.mxu1 %v432_v31  ;;  %v3307_v31 = vld [vmem:[#allocation6 + $0x3e0] ss:$16 sps:$4 sm:$0xff]  }
 0x17e   :  { %1244 = vmatprep.subr.bf16.mxu0 %v3225_v29  ;;  %1326 = vmatprep.subr.bf16.mxu1 %v3228_v30  ;;  %v3312_v29 = vld [vmem:[#allocation6 + $0x3ec] ss:$16 sps:$4 sm:$0xff]   ;;  %v423_v30 = vmul.f32 0.01, %v3807_v16 }
 0x180   :  { %1245 = vmatpush1.bf16.msra.mxu0 %v3223_v32  ;;  %1327 = vmatpush1.bf16.msra.mxu1 %v3226_v33  ;;  %v3310_v32 = vld [vmem:[#allocation6 + $0x3e8] ss:$16 sps:$4 sm:$0xff]   ;;  %v427_v33 = vsel %vm419_vm4, %v3807_v16, %v423_v30  ;;  %v3327_v16 = vld [vmem:[#allocation7 + $0x44] ss:$16 sps:$4 sm:$0xff]   ;;  %v3391_v30 = vld [vmem:[#allocation7 + $0x1a0] ss:$16 sps:$4 sm:$0xff]  }
 0x181   :  { %1246 = vmatprep.subr.bf16.mxu0 %v3231_v34  ;;  %1328 = vmatprep.subr.bf16.mxu1 %v3234_v35  ;;  %v431_v34 = vpack.c.bf16 %v427_v33, %v427_v33  ;;  %v3315_v35 = vld [vmem:[#allocation7 + $0x4] ss:$16 sps:$4 sm:$0xff]   ;;  %v3402_v33 = vld [vmem:[#allocation7 + $0x1cc] ss:$16 sps:$4 sm:$0xff]  }
 0x184   :  { %1247 = vmatpush1.bf16.msra.mxu0 %v3229_v36  ;;  %1329 = vmatpush1.bf16.msra.mxu1 %v3232_v37  ;;  %v3318_v36 = vld [vmem:[#allocation7 + $0xc] ss:$16 sps:$4 sm:$0xff]   ;;  %v3313_v37 = vld [vmem:[#allocation7] ss:$16 sps:$4 sm:$0xff]  }
 0x185   :  { %1248 = vmatprep.subr.bf16.mxu0 %v3237_v38  ;;  %1330 = vmatprep.subr.bf16.mxu1 %v3240_v39  ;;  %v3316_v38 = vld [vmem:[#allocation7 + $0x8] ss:$16 sps:$4 sm:$0xff]   ;;  %v3321_v39 = vld [vmem:[#allocation7 + $0x24] ss:$16 sps:$4 sm:$0xff]  }
 0x188   :  { %1249 = vmatpush1.bf16.msra.mxu0 %v3235_v41  ;;  %1331 = vmatpush1.bf16.msra.mxu1 %v3238_v42  ;;  %v3324_v41 = vld [vmem:[#allocation7 + $0x2c] ss:$16 sps:$4 sm:$0xff]   ;;  %v3319_v42 = vld [vmem:[#allocation7 + $0x20] ss:$16 sps:$4 sm:$0xff]  }
 0x189   :  { %1250 = vmatprep.subr.bf16.mxu0 %v3243_v43  ;;  %1332 = vmatprep.subr.bf16.mxu1 %v3246_v44  ;;  %v3322_v43 = vld [vmem:[#allocation7 + $0x28] ss:$16 sps:$4 sm:$0xff]   ;;  %v3330_v44 = vld [vmem:[#allocation7 + $0x4c] ss:$16 sps:$4 sm:$0xff]  }
 0x18c   :  { %1251 = vmatpush1.bf16.msra.mxu0 %v3241_v45  ;;  %1333 = vmatpush1.bf16.msra.mxu1 %v3244_v46  ;;  %v3325_v45 = vld [vmem:[#allocation7 + $0x40] ss:$16 sps:$4 sm:$0xff]   ;;  %v3328_v46 = vld [vmem:[#allocation7 + $0x48] ss:$16 sps:$4 sm:$0xff]  }
 0x18d   :  { %1252 = vmatprep.subr.bf16.mxu0 %v3249_v47  ;;  %1334 = vmatprep.subr.bf16.mxu1 %v3252_v48  ;;  %v3333_v47 = vld [vmem:[#allocation7 + $0x64] ss:$16 sps:$4 sm:$0xff]   ;;  %v3336_v48 = vld [vmem:[#allocation7 + $0x6c] ss:$16 sps:$4 sm:$0xff]  }
 0x190   :  { %1253 = vmatpush1.bf16.msra.mxu0 %v3247_v50  ;;  %1335 = vmatpush1.bf16.msra.mxu1 %v3250_v54  ;;  %v3331_v50 = vld [vmem:[#allocation7 + $0x60] ss:$16 sps:$4 sm:$0xff]   ;;  %v3334_v54 = vld [vmem:[#allocation7 + $0x68] ss:$16 sps:$4 sm:$0xff]  }
 0x191   :  { %1254 = vmatprep.subr.bf16.mxu0 %v3255_v55  ;;  %1336 = vmatprep.subr.bf16.mxu1 %v3258_v56  ;;  %v3339_v55 = vld [vmem:[#allocation7 + $0x84] ss:$16 sps:$4 sm:$0xff]   ;;  %v3342_v56 = vld [vmem:[#allocation7 + $0x8c] ss:$16 sps:$4 sm:$0xff]  }
 0x194   :  { %1255 = vmatpush1.bf16.msra.mxu0 %v3253_v57  ;;  %1337 = vmatpush1.bf16.msra.mxu1 %v3256_v58  ;;  %v3337_v57 = vld [vmem:[#allocation7 + $0x80] ss:$16 sps:$4 sm:$0xff]   ;;  %v3340_v58 = vld [vmem:[#allocation7 + $0x88] ss:$16 sps:$4 sm:$0xff]  }
 0x195   :  { %1256 = vmatprep.subr.bf16.mxu0 %v3261_v59  ;;  %1338 = vmatprep.subr.bf16.mxu1 %v3264_v60  ;;  %v3343_v59 = vld [vmem:[#allocation7 + $0xa0] ss:$16 sps:$4 sm:$0xff]   ;;  %v3345_v60 = vld [vmem:[#allocation7 + $0xa4] ss:$16 sps:$4 sm:$0xff]  }
 0x198   :  { %1257 = vmatpush1.bf16.msra.mxu0 %v3259_v61  ;;  %1339 = vmatpush1.bf16.msra.mxu1 %v3262_v62  ;;  %v3346_v61 = vld [vmem:[#allocation7 + $0xa8] ss:$16 sps:$4 sm:$0xff]   ;;  %v3348_v62 = vld [vmem:[#allocation7 + $0xac] ss:$16 sps:$4 sm:$0xff]  }
 0x199   :  { %1258 = vmatprep.subr.bf16.mxu0 %v3267_v63  ;;  %1340 = vmatprep.subr.bf16.mxu1 %v3270_v0  ;;  %v3351_v63 = vld [vmem:[#allocation7 + $0xc4] ss:$16 sps:$4 sm:$0xff]   ;;  %v3354_v0 = vld [vmem:[#allocation7 + $0xcc] ss:$16 sps:$4 sm:$0xff]  }
 0x19c   :  { %1259 = vmatpush1.bf16.msra.mxu0 %v3265_v1  ;;  %1341 = vmatpush1.bf16.msra.mxu1 %v3268_v2  ;;  %v3349_v1 = vld [vmem:[#allocation7 + $0xc0] ss:$16 sps:$4 sm:$0xff]   ;;  %v3352_v2 = vld [vmem:[#allocation7 + $0xc8] ss:$16 sps:$4 sm:$0xff]  }
 0x19d   :  { %1260 = vmatprep.subr.bf16.mxu0 %v3273_v3  ;;  %1342 = vmatprep.subr.bf16.mxu1 %v3276_v4  ;;  %v3357_v3 = vld [vmem:[#allocation7 + $0xe4] ss:$16 sps:$4 sm:$0xff]   ;;  %v3360_v4 = vld [vmem:[#allocation7 + $0xec] ss:$16 sps:$4 sm:$0xff]  }
 0x1a0   :  { %1261 = vmatpush1.bf16.msra.mxu0 %v3271_v6  ;;  %1343 = vmatpush1.bf16.msra.mxu1 %v3274_v8  ;;  %v3355_v6 = vld [vmem:[#allocation7 + $0xe0] ss:$16 sps:$4 sm:$0xff]   ;;  %v3358_v8 = vld [vmem:[#allocation7 + $0xe8] ss:$16 sps:$4 sm:$0xff]  }
 0x1a1   :  { %1262 = vmatprep.subr.bf16.mxu0 %v3279_v10  ;;  %1344 = vmatprep.subr.bf16.mxu1 %v3282_v12  ;;  %v3363_v10 = vld [vmem:[#allocation7 + $0x104] ss:$16 sps:$4 sm:$0xff]   ;;  %v3366_v12 = vld [vmem:[#allocation7 + $0x10c] ss:$16 sps:$4 sm:$0xff]  }
 0x1a4   :  { %1263 = vmatpush1.bf16.msra.mxu0 %v3277_v5  ;;  %1345 = vmatpush1.bf16.msra.mxu1 %v3280_v7  ;;  %v3361_v5 = vld [vmem:[#allocation7 + $0x100] ss:$16 sps:$4 sm:$0xff]   ;;  %v3364_v7 = vld [vmem:[#allocation7 + $0x108] ss:$16 sps:$4 sm:$0xff]  }
 0x1a5   :  { %1264 = vmatprep.subr.bf16.mxu0 %v3285_v9  ;;  %1346 = vmatprep.subr.bf16.mxu1 %v3288_v20  ;;  %v3369_v9 = vld [vmem:[#allocation7 + $0x124] ss:$16 sps:$4 sm:$0xff]   ;;  %v3372_v20 = vld [vmem:[#allocation7 + $0x12c] ss:$16 sps:$4 sm:$0xff]  }
 0x1a8   :  { %1265 = vmatpush1.bf16.msra.mxu0 %v3283_v19  ;;  %1347 = vmatpush1.bf16.msra.mxu1 %v3286_v13  ;;  %v3367_v19 = vld [vmem:[#allocation7 + $0x120] ss:$16 sps:$4 sm:$0xff]   ;;  %v3370_v13 = vld [vmem:[#allocation7 + $0x128] ss:$16 sps:$4 sm:$0xff]  }
 0x1a9   :  { %1266 = vmatprep.subr.bf16.mxu0 %v3291_v14  ;;  %1348 = vmatprep.subr.bf16.mxu1 %v3294_v11  ;;  %v3375_v14 = vld [vmem:[#allocation7 + $0x144] ss:$16 sps:$4 sm:$0xff]   ;;  %v3378_v11 = vld [vmem:[#allocation7 + $0x14c] ss:$16 sps:$4 sm:$0xff]  }
 0x1ac   :  { %1267 = vmatpush1.bf16.msra.mxu0 %v3289_v15  ;;  %1349 = vmatpush1.bf16.msra.mxu1 %v3292_v17  ;;  %v3373_v15 = vld [vmem:[#allocation7 + $0x140] ss:$16 sps:$4 sm:$0xff]   ;;  %v3376_v17 = vld [vmem:[#allocation7 + $0x148] ss:$16 sps:$4 sm:$0xff]  }
 0x1ad   :  { %1268 = vmatprep.subr.bf16.mxu0 %v3297_v18  ;;  %1350 = vmatprep.subr.bf16.mxu1 %v3300_v21  ;;  %v3381_v18 = vld [vmem:[#allocation7 + $0x164] ss:$16 sps:$4 sm:$0xff]   ;;  %v3384_v21 = vld [vmem:[#allocation7 + $0x16c] ss:$16 sps:$4 sm:$0xff]  }
 0x1b0   :  { %1269 = vmatpush1.bf16.msra.mxu0 %v3295_v22  ;;  %1351 = vmatpush1.bf16.msra.mxu1 %v3298_v23  ;;  %v3379_v22 = vld [vmem:[#allocation7 + $0x160] ss:$16 sps:$4 sm:$0xff]   ;;  %v3382_v23 = vld [vmem:[#allocation7 + $0x168] ss:$16 sps:$4 sm:$0xff]  }
 0x1b1   :  { %1270 = vmatprep.subr.bf16.mxu0 %v3303_v24  ;;  %1352 = vmatprep.subr.bf16.mxu1 %v3306_v25  ;;  %v3387_v24 = vld [vmem:[#allocation7 + $0x184] ss:$16 sps:$4 sm:$0xff]   ;;  %v3390_v25 = vld [vmem:[#allocation7 + $0x18c] ss:$16 sps:$4 sm:$0xff]  }
 0x1b4   :  { %1271 = vmatpush1.bf16.msra.mxu0 %v3301_v26  ;;  %1353 = vmatpush1.bf16.msra.mxu1 %v3304_v27  ;;  %v3385_v26 = vld [vmem:[#allocation7 + $0x180] ss:$16 sps:$4 sm:$0xff]   ;;  %v3388_v27 = vld [vmem:[#allocation7 + $0x188] ss:$16 sps:$4 sm:$0xff]  }
 0x1b5   :  { %1272 = vmatprep.subr.bf16.mxu0 %v3309_v28  ;;  %1354 = vmatprep.subr.bf16.mxu1 %v3312_v29  ;;  %v3393_v28 = vld [vmem:[#allocation7 + $0x1a4] ss:$16 sps:$4 sm:$0xff]   ;;  %v3396_v29 = vld [vmem:[#allocation7 + $0x1ac] ss:$16 sps:$4 sm:$0xff]  }
 0x1b8   :  { %1273 = vmatpush1.bf16.msra.mxu0 %v3307_v31  ;;  %1355 = vmatpush1.bf16.msra.mxu1 %v3310_v32  ;;  %v3394_v31 = vld [vmem:[#allocation7 + $0x1a8] ss:$16 sps:$4 sm:$0xff]   ;;  %v3399_v32 = vld [vmem:[#allocation7 + $0x1c4] ss:$16 sps:$4 sm:$0xff]  }
 0x1b9   :  { %2343 = vmatprep.subr.bf16.mxu0 %v3315_v35  ;;  %2425 = vmatprep.subr.bf16.mxu1 %v3318_v36  ;;  %v3400_v35 = vld [vmem:[#allocation7 + $0x1c8] ss:$16 sps:$4 sm:$0xff]   ;;  %v3405_v36 = vld [vmem:[#allocation7 + $0x1e4] ss:$16 sps:$4 sm:$0xff]  }
 0x1bb   :  { %1275 = vmatmul.mubr.bf16.vlgmr.msra.gmra.mrb[4].mxu0 %v431_v34  ;;  %1357 = vmatmul.mubr.bf16.vlgmr.msra.gmra.mrb[4].mxu1 %v431_v34  ;;  %v3397_v34 = vld [vmem:[#allocation7 + $0x1c0] ss:$16 sps:$4 sm:$0xff]  }
 0x1bc   :  { %2344 = vmatpush1.bf16.msra.mxu0 %v3313_v37  ;;  %2426 = vmatpush1.bf16.msra.mxu1 %v3316_v38  ;;  %v3408_v37 = vld [vmem:[#allocation7 + $0x1ec] ss:$16 sps:$4 sm:$0xff]   ;;  %v3403_v38 = vld [vmem:[#allocation7 + $0x1e0] ss:$16 sps:$4 sm:$0xff]  }
 0x1bd   :  { %2345 = vmatprep.subr.bf16.mxu0 %v3321_v39  ;;  %2427 = vmatprep.subr.bf16.mxu1 %v3324_v41  ;;  %v3406_v39 = vld [vmem:[#allocation7 + $0x1e8] ss:$16 sps:$4 sm:$0xff]   ;;  %v3411_v41 = vld [vmem:[#allocation7 + $0x204] ss:$16 sps:$4 sm:$0xff]  }
 0x1c0   :  { %2346 = vmatpush1.bf16.msra.mxu0 %v3319_v42  ;;  %2428 = vmatpush1.bf16.msra.mxu1 %v3322_v43  ;;  %v3414_v42 = vld [vmem:[#allocation7 + $0x20c] ss:$16 sps:$4 sm:$0xff]  }
 0x1c1   :  { %2347 = vmatprep.subr.bf16.mxu0 %v3327_v16  ;;  %2429 = vmatprep.subr.bf16.mxu1 %v3330_v44 }
 0x1c4   :  { %2348 = vmatpush1.bf16.msra.mxu0 %v3325_v45  ;;  %2430 = vmatpush1.bf16.msra.mxu1 %v3328_v46 }
 0x1c5   :  { %2349 = vmatprep.subr.bf16.mxu0 %v3333_v47  ;;  %2431 = vmatprep.subr.bf16.mxu1 %v3336_v48 }
 0x1c8   :  { %2350 = vmatpush1.bf16.msra.mxu0 %v3331_v50  ;;  %2432 = vmatpush1.bf16.msra.mxu1 %v3334_v54 }
 0x1c9   :  { %2351 = vmatprep.subr.bf16.mxu0 %v3339_v55  ;;  %2433 = vmatprep.subr.bf16.mxu1 %v3342_v56 }
 0x1cc   :  { %2352 = vmatpush1.bf16.msra.mxu0 %v3337_v57  ;;  %2434 = vmatpush1.bf16.msra.mxu1 %v3340_v58 }
 0x1cd   :  { %2353 = vmatprep.subr.bf16.mxu0 %v3345_v60  ;;  %2435 = vmatprep.subr.bf16.mxu1 %v3348_v62 }
 0x1d0   :  { %2354 = vmatpush1.bf16.msra.mxu0 %v3343_v59  ;;  %2436 = vmatpush1.bf16.msra.mxu1 %v3346_v61 }
 0x1d1   :  { %2355 = vmatprep.subr.bf16.mxu0 %v3351_v63  ;;  %2437 = vmatprep.subr.bf16.mxu1 %v3354_v0 }
 0x1d4   :  { %2356 = vmatpush1.bf16.msra.mxu0 %v3349_v1  ;;  %2438 = vmatpush1.bf16.msra.mxu1 %v3352_v2 }
 0x1d5   :  { %2357 = vmatprep.subr.bf16.mxu0 %v3357_v3  ;;  %2439 = vmatprep.subr.bf16.mxu1 %v3360_v4 }
 0x1d8   :  { %2358 = vmatpush1.bf16.msra.mxu0 %v3355_v6  ;;  %2440 = vmatpush1.bf16.msra.mxu1 %v3358_v8 }
 0x1d9   :  { %2359 = vmatprep.subr.bf16.mxu0 %v3363_v10  ;;  %2441 = vmatprep.subr.bf16.mxu1 %v3366_v12 }
 0x1dc   :  { %2360 = vmatpush1.bf16.msra.mxu0 %v3361_v5  ;;  %2442 = vmatpush1.bf16.msra.mxu1 %v3364_v7 }
 0x1dd   :  { %2361 = vmatprep.subr.bf16.mxu0 %v3369_v9  ;;  %2443 = vmatprep.subr.bf16.mxu1 %v3372_v20 }
 0x1e0   :  { %2362 = vmatpush1.bf16.msra.mxu0 %v3367_v19  ;;  %2444 = vmatpush1.bf16.msra.mxu1 %v3370_v13 }
 0x1e1   :  { %2363 = vmatprep.subr.bf16.mxu0 %v3375_v14  ;;  %2445 = vmatprep.subr.bf16.mxu1 %v3378_v11 }
 0x1e4   :  { %2364 = vmatpush1.bf16.msra.mxu0 %v3373_v15  ;;  %2446 = vmatpush1.bf16.msra.mxu1 %v3376_v17 }
 0x1e5   :  { %2365 = vmatprep.subr.bf16.mxu0 %v3381_v18  ;;  %2447 = vmatprep.subr.bf16.mxu1 %v3384_v21 }
 0x1e8   :  { %2366 = vmatpush1.bf16.msra.mxu0 %v3379_v22  ;;  %2448 = vmatpush1.bf16.msra.mxu1 %v3382_v23 }
 0x1e9   :  { %2367 = vmatprep.subr.bf16.mxu0 %v3387_v24  ;;  %2449 = vmatprep.subr.bf16.mxu1 %v3390_v25 }
 0x1ec   :  { %2368 = vmatpush1.bf16.msra.mxu0 %v3385_v26  ;;  %2450 = vmatpush1.bf16.msra.mxu1 %v3388_v27 }
 0x1ed   :  { %2369 = vmatprep.subr.bf16.mxu0 %v3393_v28  ;;  %2451 = vmatprep.subr.bf16.mxu1 %v3396_v29 }
 0x1f0   :  { %2370 = vmatpush1.bf16.msra.mxu0 %v3391_v30  ;;  %2452 = vmatpush1.bf16.msra.mxu1 %v3394_v31 }
 0x1f1   :  { %2371 = vmatprep.subr.bf16.mxu0 %v3399_v32  ;;  %2453 = vmatprep.subr.bf16.mxu1 %v3402_v33 }
 0x1f4   :  { %2372 = vmatpush1.bf16.msra.mxu0 %v3397_v34  ;;  %2454 = vmatpush1.bf16.msra.mxu1 %v3400_v35 }
 0x1f5   :  { %2373 = vmatprep.subr.bf16.mxu0 %v3405_v36  ;;  %2455 = vmatprep.subr.bf16.mxu1 %v3408_v37 }
 0x1f8   :  { %2374 = vmatpush1.bf16.msra.mxu0 %v3403_v38  ;;  %2456 = vmatpush1.bf16.msra.mxu1 %v3406_v39 }
 0x1f9   :  { %2384 = vmatprep.subr.bf16.mxu0 %v3411_v41  ;;  %2466 = vmatprep.subr.bf16.mxu1 %v3414_v42 }
 0x28e   :  { %v3812_v43 = vpop.f32.mrb[4].mxu0  ;;  %v3814_v16 = vpop.f32.mrb[4].mxu1 }
 0x28f   :  { %v1369_v44 = vrot.slane %v3812_v43, 4  ;;  %v1397_v45 = vmul.f32 %v3812_v43, %v3812_v43  ;;  %v1381_v46 = vrot.slane %v3814_v16, 4  ;;  %v1399_v47 = vmul.f32 %v3814_v16, %v3814_v16  ;;  %v3822_v48 = vpop.f32.mrb[5].mxu0  ;;  %v3824_v50 = vpop.f32.mrb[5].mxu1 }
 0x290   :  { %v1375_v54 = vrot.slane %v3822_v48, 4  ;;  %v1398_v55 = vmul.f32 %v3822_v48, %v3822_v48  ;;  %v1387_v56 = vrot.slane %v3824_v50, 4  ;;  %v1400_v57 = vmul.f32 %v3824_v50, %v3824_v50  ;;  %v1280_v58 = vpop.f32.mrb[6].mxu0  ;;  %v1362_v59 = vpop.f32.mrb[6].mxu1 }
 0x291   :  { %v1370_v60 = vadd.f32 %v1369_v44, %v3812_v43  ;;  %v1401_v61 = vrot.slane %v1397_v45, 4  ;;  %v1382_v62 = vadd.f32 %v1381_v46, %v3814_v16  ;;  %v1413_v63 = vrot.slane %v1399_v47, 4  ;;  %v1281_v0 = vpop.f32.mrb[7].mxu0  ;;  %v1363_v1 = vpop.f32.mrb[7].mxu1 }
 0x292   :  { %v1376_v2 = vadd.f32 %v1375_v54, %v3822_v48  ;;  %v1407_v3 = vrot.slane %v1398_v55, 4  ;;  %v1388_v4 = vadd.f32 %v1387_v56, %v3824_v50  ;;  %v1419_v6 = vrot.slane %v1400_v57, 4 }
 0x293   :  { %v1371_v8 = vrot.slane %v1370_v60, 2  ;;  %v1402_v10 = vadd.f32 %v1401_v61, %v1397_v45  ;;  %v1383_v12 = vrot.slane %v1382_v62, 2  ;;  %v1414_v5 = vadd.f32 %v1413_v63, %v1399_v47 }
 0x294   :  { %v1377_v7 = vrot.slane %v1376_v2, 2  ;;  %v1408_v9 = vadd.f32 %v1407_v3, %v1398_v55  ;;  %v1389_v20 = vrot.slane %v1388_v4, 2  ;;  %v1420_v19 = vadd.f32 %v1419_v6, %v1400_v57 }
 0x295   :  { %v1372_v13 = vadd.f32 %v1371_v8, %v1370_v60  ;;  %v1403_v14 = vrot.slane %v1402_v10, 2  ;;  %v1384_v11 = vadd.f32 %v1383_v12, %v1382_v62  ;;  %v1415_v15 = vrot.slane %v1414_v5, 2 }
 0x296   :  { %v1378_v17 = vadd.f32 %v1377_v7, %v1376_v2  ;;  %v1409_v18 = vrot.slane %v1408_v9, 2  ;;  %v1390_v21 = vadd.f32 %v1389_v20, %v1388_v4  ;;  %v1421_v22 = vrot.slane %v1420_v19, 2 }
 0x297   :  { %v1373_v23 = vrot.slane %v1372_v13, 1  ;;  %v1404_v24 = vadd.f32 %v1403_v14, %v1402_v10  ;;  %v1385_v25 = vrot.slane %v1384_v11, 1  ;;  %v1416_v26 = vadd.f32 %v1415_v15, %v1414_v5 }
 0x298   :  { %v1379_v27 = vrot.slane %v1378_v17, 1  ;;  %v1410_v28 = vadd.f32 %v1409_v18, %v1408_v9  ;;  %v1391_v29 = vrot.slane %v1390_v21, 1  ;;  %v1422_v30 = vadd.f32 %v1421_v22, %v1420_v19 }
 0x299   :  { %v1374_v31 = vadd.f32 %v1373_v23, %v1372_v13  ;;  %v1405_v32 = vrot.slane %v1404_v24, 1  ;;  %v1386_v33 = vadd.f32 %v1385_v25, %v1384_v11  ;;  %v1417_v34 = vrot.slane %v1416_v26, 1  ;;  %v1366_v11 = vld [vmem:[#allocation9 + $0x2] ss:$8 sm:$0xf] }
 0x29a   :  { %v1380_v35 = vadd.f32 %v1379_v27, %v1378_v17  ;;  %v1411_v36 = vrot.slane %v1410_v28, 1  ;;  %v1392_v37 = vadd.f32 %v1391_v29, %v1390_v21  ;;  %v1423_v38 = vrot.slane %v1422_v30, 1 }
 0x29b   :  { %v1393_v39 = vmul.f32 0.125, %v1374_v31  ;;  %v1406_v41 = vadd.f32 %v1405_v32, %v1404_v24  ;;  %v1395_v42 = vmul.f32 0.125, %v1386_v33  ;;  %v1418_v44 = vadd.f32 %v1417_v34, %v1416_v26 }
 0x29c   :  { %v1394_v45 = vmul.f32 0.125, %v1380_v35  ;;  %v1412_v46 = vadd.f32 %v1411_v36, %v1410_v28  ;;  %v1396_v47 = vmul.f32 0.125, %v1392_v37  ;;  %v1424_v54 = vadd.f32 %v1423_v38, %v1422_v30  ;;  %v1368_v37 = vld [vmem:[#allocation9 + $0x3] ss:$8 sm:$0xf] }
 0x29d   :  { %v1425_v55 = vmul.f32 0.125, %v1406_v41  ;;  %v1429_v56 = vmul.f32 %v1393_v39, %v1393_v39  ;;  %v1427_v57 = vmul.f32 0.125, %v1418_v44  ;;  %v1431_v58 = vmul.f32 %v1395_v42, %v1395_v42 }
 0x29e   :  { %v1426_v59 = vmul.f32 0.125, %v1412_v46  ;;  %v1430_v60 = vmul.f32 %v1394_v45, %v1394_v45  ;;  %v1428_v61 = vmul.f32 0.125, %v1424_v54  ;;  %v1432_v62 = vmul.f32 %v1396_v47, %v1396_v47 }
 0x29f   :  { %v1433_v63 = vsub.f32 %v1425_v55, %v1429_v56  ;;  %v1435_v0 = vsub.f32 %v1427_v57, %v1431_v58  ;;  %v3409_v58 = vld [vmem:[#allocation7 + $0x200] ss:$16 sps:$4 sm:$0xff]  }
 0x2a0   :  { %v1434_v1 = vsub.f32 %v1426_v59, %v1430_v60  ;;  %v1436_v2 = vsub.f32 %v1428_v61, %v1432_v62  ;;  %v3412_v59 = vld [vmem:[#allocation7 + $0x208] ss:$16 sps:$4 sm:$0xff]   ;;  %v3417_v62 = vld [vmem:[#allocation7 + $0x224] ss:$16 sps:$4 sm:$0xff]  }
 0x2a1   :  { %v1437_v3 = vadd.f32 1e-05, %v1433_v63  ;;  %v1439_v4 = vadd.f32 1e-05, %v1435_v0  ;;  %v3420_v63 = vld [vmem:[#allocation7 + $0x22c] ss:$16 sps:$4 sm:$0xff]  }
 0x2a2   :  { %v1438_v6 = vadd.f32 1e-05, %v1434_v1  ;;  %v1440_v8 = vadd.f32 1e-05, %v1436_v2  ;;  %v3415_v1 = vld [vmem:[#allocation7 + $0x220] ss:$16 sps:$4 sm:$0xff]  }
 0x2a3   :  { %3513 = vrsqrt.f32 %v1437_v3  ;;  %v3418_v2 = vld [vmem:[#allocation7 + $0x228] ss:$16 sps:$4 sm:$0xff]   ;;  %v3423_v3 = vld [vmem:[#allocation7 + $0x244] ss:$16 sps:$4 sm:$0xff]  }
 0x2a4   :  { %3515 = vrsqrt.f32 %v1439_v4  ;;  %v3426_v4 = vld [vmem:[#allocation7 + $0x24c] ss:$16 sps:$4 sm:$0xff]  }
 0x2a5   :  { %3517 = vrsqrt.f32 %v1438_v6  ;;  %v3421_v6 = vld [vmem:[#allocation7 + $0x240] ss:$16 sps:$4 sm:$0xff]  }
 0x2a6   :  { %3519 = vrsqrt.f32 %v1440_v8  ;;  %v3424_v8 = vld [vmem:[#allocation7 + $0x248] ss:$16 sps:$4 sm:$0xff]  }
 0x2ad   :  { %v3514_v10 = vpop.eup %3513 }
 0x2ae   :  { %v3516_v12 = vpop.eup %3515 }
 0x2af   :  { %v3518_v5 = vpop.eup %3517 }
 0x2b0   :  { %v3520_v7 = vpop.eup %3519  ;;  %v1449_v9 = vcombine.low %v3514_v10, %v3518_v5  ;;  %v3429_v10 = vld [vmem:[#allocation7 + $0x264] ss:$16 sps:$4 sm:$0xff]   ;;  %v3427_v5 = vld [vmem:[#allocation7 + $0x260] ss:$16 sps:$4 sm:$0xff]  }
 0x2b1   :  { %v1450_v20 = vcombine.low %v3516_v12, %v3520_v7  ;;  %v3432_v12 = vld [vmem:[#allocation7 + $0x26c] ss:$16 sps:$4 sm:$0xff]   ;;  %v3430_v7 = vld [vmem:[#allocation7 + $0x268] ss:$16 sps:$4 sm:$0xff]  }
 0x2b2   :  { %v1457_v19 = vrot.slane %v1449_v9, %v3779_v40  ;;  %v3435_v9 = vld [vmem:[#allocation7 + $0x284] ss:$16 sps:$4 sm:$0xff]  }
 0x2b3   :  { %v1464_v13 = vrot.slane %v1450_v20, %v3779_v40  ;;  %v3438_v20 = vld [vmem:[#allocation7 + $0x28c] ss:$16 sps:$4 sm:$0xff]  }
 0x2b5   :  { %v1465_v14 = vcombine.low %v1457_v19, %v1464_v13  ;;  %v3433_v19 = vld [vmem:[#allocation7 + $0x280] ss:$16 sps:$4 sm:$0xff]   ;;  %v3436_v13 = vld [vmem:[#allocation7 + $0x288] ss:$16 sps:$4 sm:$0xff]  }
 0x2b7   :  { %v1472_v15 = vrot.slane %v1465_v14, %v3779_v40  ;;  %v3441_v14 = vld [vmem:[#allocation7 + $0x2a4] ss:$16 sps:$4 sm:$0xff]  }
 0x2b9   :  { %v1474_v17 = vmul.f32 %v1472_v15, %v1366_v11  ;;  %v3444_v11 = vld [vmem:[#allocation7 + $0x2ac] ss:$16 sps:$4 sm:$0xff]   ;;  %v3439_v15 = vld [vmem:[#allocation7 + $0x2a0] ss:$16 sps:$4 sm:$0xff]  }
 0x2bb   :  { %v1479_v18 = vrot.slane %v1474_v17, %v3783_v49  ;;  %v1483_v21 = vrot.slane %v1474_v17, %v3786_v51  ;;  %v1487_v22 = vrot.slane %v1474_v17, %v3788_v52  ;;  %v1491_v23 = vrot.slane %v1474_v17, %v3790_v53  ;;  %v3442_v17 = vld [vmem:[#allocation7 + $0x2a8] ss:$16 sps:$4 sm:$0xff]  }
 0x2bd   :  { %v1496_v24 = vmul.f32 %v1479_v18, %v1393_v39  ;;  %v1497_v25 = vmul.f32 %v1483_v21, %v1394_v45  ;;  %v1498_v26 = vmul.f32 %v1487_v22, %v1395_v42  ;;  %v1499_v27 = vmul.f32 %v1491_v23, %v1396_v47 }
 0x2be   :  { %v1533_v28 = vmul.f32 %v1491_v23, %v3824_v50  ;;  %v1531_v29 = vmul.f32 %v1483_v21, %v3822_v48  ;;  %v1530_v30 = vmul.f32 %v1479_v18, %v3812_v43  ;;  %v1532_v31 = vmul.f32 %v1487_v22, %v3814_v16  ;;  %v3447_v18 = vld [vmem:[#allocation7 + $0x2c4] ss:$16 sps:$4 sm:$0xff]   ;;  %v3450_v21 = vld [vmem:[#allocation7 + $0x2cc] ss:$16 sps:$4 sm:$0xff]   ;;  %v3445_v22 = vld [vmem:[#allocation7 + $0x2c0] ss:$16 sps:$4 sm:$0xff]  }
 0x2bf   :  { %v1504_v32 = vcombine.low %v1496_v24, %v1497_v25  ;;  %v1505_v33 = vcombine.low %v1498_v26, %v1499_v27  ;;  %v3448_v23 = vld [vmem:[#allocation7 + $0x2c8] ss:$16 sps:$4 sm:$0xff]   ;;  %v3453_v24 = vld [vmem:[#allocation7 + $0x2e4] ss:$16 sps:$4 sm:$0xff]   ;;  %v3456_v25 = vld [vmem:[#allocation7 + $0x2ec] ss:$16 sps:$4 sm:$0xff]  }
 0x2c0   :  { %v3451_v26 = vld [vmem:[#allocation7 + $0x2e0] ss:$16 sps:$4 sm:$0xff]   ;;  %v3454_v27 = vld [vmem:[#allocation7 + $0x2e8] ss:$16 sps:$4 sm:$0xff]  }
 0x2c1   :  { %v1512_v34 = vrot.slane %v1504_v32, %v3779_v40  ;;  %v1519_v35 = vrot.slane %v1505_v33, %v3779_v40  ;;  %v3465_v32 = vld [vmem:[#allocation7 + $0x324] ss:$16 sps:$4 sm:$0xff]   ;;  %v3468_v33 = vld [vmem:[#allocation7 + $0x32c] ss:$16 sps:$4 sm:$0xff]  }
 0x2c3   :  { %v1520_v36 = vcombine.low %v1512_v34, %v1519_v35  ;;  %v3463_v34 = vld [vmem:[#allocation7 + $0x320] ss:$16 sps:$4 sm:$0xff]   ;;  %v3466_v35 = vld [vmem:[#allocation7 + $0x328] ss:$16 sps:$4 sm:$0xff]  }
 0x2c5   :  { %v1527_v38 = vrot.slane %v1520_v36, %v3779_v40  ;;  %v3471_v36 = vld [vmem:[#allocation7 + $0x344] ss:$16 sps:$4 sm:$0xff]  }
 0x2c7   :  { %v1529_v39 = vsub.f32 %v1368_v37, %v1527_v38  ;;  %v3474_v37 = vld [vmem:[#allocation7 + $0x34c] ss:$16 sps:$4 sm:$0xff]   ;;  %v3469_v38 = vld [vmem:[#allocation7 + $0x340] ss:$16 sps:$4 sm:$0xff]  }
 0x2c9   :  { %v1550_v41 = vrot.slane %v1529_v39, %v3790_v53  ;;  %v1542_v50 = vrot.slane %v1529_v39, %v3786_v51  ;;  %v1538_v48 = vrot.slane %v1529_v39, %v3783_v49  ;;  %v1546_v43 = vrot.slane %v1529_v39, %v3788_v52  ;;  %v3472_v39 = vld [vmem:[#allocation7 + $0x348] ss:$16 sps:$4 sm:$0xff]  }
 0x2cb   :  { %v1558_v16 = vadd.f32 %v1550_v41, %v1533_v28  ;;  %v1556_v42 = vadd.f32 %v1542_v50, %v1531_v29  ;;  %v1555_v44 = vadd.f32 %v1538_v48, %v1530_v30  ;;  %v3854_v45 = vadd.f32 %v1546_v43, %v1532_v31  ;;  %v3459_v28 = vld [vmem:[#allocation7 + $0x304] ss:$16 sps:$4 sm:$0xff]   ;;  %v3462_v29 = vld [vmem:[#allocation7 + $0x30c] ss:$16 sps:$4 sm:$0xff]   ;;  %v3457_v30 = vld [vmem:[#allocation7 + $0x300] ss:$16 sps:$4 sm:$0xff]  }
 0x2cc   :  { %v3460_v31 = vld [vmem:[#allocation7 + $0x308] ss:$16 sps:$4 sm:$0xff]   ;;  %v3477_v41 = vld [vmem:[#allocation7 + $0x364] ss:$16 sps:$4 sm:$0xff]   ;;  %v3480_v50 = vld [vmem:[#allocation7 + $0x36c] ss:$16 sps:$4 sm:$0xff]  }
 0x2cd   :  { %vm1560_vm5 = vcmp.ge.f32.partialorder %v1556_v42, 0.0  ;;  %v1564_v46 = vmul.f32 0.01, %v1556_v42  ;;  %vm1559_vm6 = vcmp.ge.f32.partialorder %v1555_v44, 0.0  ;;  %v1563_v47 = vmul.f32 0.01, %v1555_v44 }
 0x2ce   :  { %vm1562_vm7 = vcmp.ge.f32.partialorder %v1558_v16, 0.0  ;;  %v1566_v54 = vmul.f32 0.01, %v1558_v16  ;;  %v3475_v48 = vld [vmem:[#allocation7 + $0x360] ss:$16 sps:$4 sm:$0xff]   ;;  %vm1561_vm8 = vcmp.ge.f32.partialorder %v3854_v45, 0.0 }
 0x2cf   :  { %v1568_v55 = vsel %vm1560_vm5, %v1556_v42, %v1564_v46  ;;  %v1567_v56 = vsel %vm1559_vm6, %v1555_v44, %v1563_v47  ;;  %v3478_v43 = vld [vmem:[#allocation7 + $0x368] ss:$16 sps:$4 sm:$0xff]   ;;  %v3486_v42 = vld [vmem:[#allocation7 + $0x38c] ss:$16 sps:$4 sm:$0xff]   ;;  %v3481_v44 = vld [vmem:[#allocation7 + $0x380] ss:$16 sps:$4 sm:$0xff]  }
 0x2d0   :  { %v1572_v57 = vpack.c.bf16 %v1568_v55, %v1568_v55  ;;  %v1571_v60 = vpack.c.bf16 %v1567_v56, %v1567_v56  ;;  %v1570_v61 = vsel %vm1562_vm7, %v1558_v16, %v1566_v54  ;;  %v3483_v16 = vld [vmem:[#allocation7 + $0x384] ss:$16 sps:$4 sm:$0xff]   ;;  %v3484_v46 = vld [vmem:[#allocation7 + $0x388] ss:$16 sps:$4 sm:$0xff]   ;;  %v3492_v54 = vld [vmem:[#allocation7 + $0x3ac] ss:$16 sps:$4 sm:$0xff]  }
 0x2d1   :  { %v1574_v0 = vpack.c.bf16 %v1570_v61, %v1570_v61  ;;  %v3489_v47 = vld [vmem:[#allocation7 + $0x3a4] ss:$16 sps:$4 sm:$0xff]   ;;  %v3487_v55 = vld [vmem:[#allocation7 + $0x3a0] ss:$16 sps:$4 sm:$0xff]   ;;  %v3490_v56 = vld [vmem:[#allocation7 + $0x3a8] ss:$16 sps:$4 sm:$0xff]  }
 0x2d2   :  { %2375 = vmatprep.mubr.bf16.mxu0 %v1572_v57  ;;  %2457 = vmatprep.mubr.bf16.mxu1 %v1572_v57  ;;  %v3495_v57 = vld [vmem:[#allocation7 + $0x3c4] ss:$16 sps:$4 sm:$0xff]  }
 0x2d3   :  { %2376 = vmatmul.mubr.bf16.vlgmr.msra.gmra.mrb[8].mxu0 %v1571_v60  ;;  %2458 = vmatmul.mubr.bf16.vlgmr.msra.gmra.mrb[8].mxu1 %v1571_v60  ;;  %v3496_v60 = vld [vmem:[#allocation7 + $0x3c8] ss:$16 sps:$4 sm:$0xff]   ;;  %v3501_v61 = vld [vmem:[#allocation7 + $0x3e4] ss:$16 sps:$4 sm:$0xff]  }
 0x2d4   :  { %2385 = vmatpush1.bf16.msra.mxu0 %v3409_v58  ;;  %2467 = vmatpush1.bf16.msra.mxu1 %v3412_v59  ;;  %v3498_v58 = vld [vmem:[#allocation7 + $0x3cc] ss:$16 sps:$4 sm:$0xff]   ;;  %v3493_v59 = vld [vmem:[#allocation7 + $0x3c0] ss:$16 sps:$4 sm:$0xff]  }
 0x2d5   :  { %2416 = vmatprep.mubr.bf16.mxu0 %v1574_v0  ;;  %2498 = vmatprep.mubr.bf16.mxu1 %v1574_v0  ;;  %v3499_v0 = vld [vmem:[#allocation7 + $0x3e0] ss:$16 sps:$4 sm:$0xff]  }
 0x2d6   :  { %2386 = vmatprep.subr.bf16.mxu0 %v3417_v62  ;;  %2468 = vmatprep.subr.bf16.mxu1 %v3420_v63  ;;  %v3504_v62 = vld [vmem:[#allocation7 + $0x3ec] ss:$16 sps:$4 sm:$0xff]   ;;  %v1565_v63 = vmul.f32 0.01, %v3854_v45 }
 0x2d8   :  { %2387 = vmatpush1.bf16.msra.mxu0 %v3415_v1  ;;  %2469 = vmatpush1.bf16.msra.mxu1 %v3418_v2  ;;  %v3502_v1 = vld [vmem:[#allocation7 + $0x3e8] ss:$16 sps:$4 sm:$0xff]   ;;  %v1569_v2 = vsel %vm1561_vm8, %v3854_v45, %v1565_v63 }
 0x2d9   :  { %2388 = vmatprep.subr.bf16.mxu0 %v3423_v3  ;;  %2470 = vmatprep.subr.bf16.mxu1 %v3426_v4  ;;  %v1573_v3 = vpack.c.bf16 %v1569_v2, %v1569_v2  ;;  %v2714_v4 = vld [vmem:[#allocation9 + $0x28] sm:$0xff] }
 0x2dc   :  { %2389 = vmatpush1.bf16.msra.mxu0 %v3421_v6  ;;  %2471 = vmatpush1.bf16.msra.mxu1 %v3424_v8  ;;  %v2716_v6 = vld [vmem:[#allocation9 + $0x38] sm:$0xff]  ;;  %v2718_v8 = vpack.c.bf16 %v2714_v4, %v2714_v4 }
 0x2dd   :  { %2390 = vmatprep.subr.bf16.mxu0 %v3429_v10  ;;  %2472 = vmatprep.subr.bf16.mxu1 %v3432_v12  ;;  %v2720_v10 = vpack.c.bf16 %v2716_v6, %v2716_v6  ;;  %v2713_v12 = vld [vmem:[#allocation9 + $0x20] sm:$0xff] }
 0x2e0   :  { %2391 = vmatpush1.bf16.msra.mxu0 %v3427_v5  ;;  %2473 = vmatpush1.bf16.msra.mxu1 %v3430_v7  ;;  %v2715_v5 = vld [vmem:[#allocation9 + $0x30] sm:$0xff]  ;;  %v2717_v7 = vpack.c.bf16 %v2713_v12, %v2713_v12 }
 0x2e1   :  { %2392 = vmatprep.subr.bf16.mxu0 %v3435_v9  ;;  %2474 = vmatprep.subr.bf16.mxu1 %v3438_v20  ;;  %v2719_v9 = vpack.c.bf16 %v2715_v5, %v2715_v5 }
 0x2e4   :  { %2393 = vmatpush1.bf16.msra.mxu0 %v3433_v19  ;;  %2475 = vmatpush1.bf16.msra.mxu1 %v3436_v13 }
 0x2e5   :  { %2394 = vmatprep.subr.bf16.mxu0 %v3441_v14  ;;  %2476 = vmatprep.subr.bf16.mxu1 %v3444_v11 }
 0x2e8   :  { %2395 = vmatpush1.bf16.msra.mxu0 %v3439_v15  ;;  %2477 = vmatpush1.bf16.msra.mxu1 %v3442_v17 }
 0x2e9   :  { %2396 = vmatprep.subr.bf16.mxu0 %v3447_v18  ;;  %2478 = vmatprep.subr.bf16.mxu1 %v3450_v21 }
 0x2ec   :  { %2397 = vmatpush1.bf16.msra.mxu0 %v3445_v22  ;;  %2479 = vmatpush1.bf16.msra.mxu1 %v3448_v23 }
 0x2ed   :  { %2398 = vmatprep.subr.bf16.mxu0 %v3453_v24  ;;  %2480 = vmatprep.subr.bf16.mxu1 %v3456_v25 }
 0x2f0   :  { %2399 = vmatpush1.bf16.msra.mxu0 %v3451_v26  ;;  %2481 = vmatpush1.bf16.msra.mxu1 %v3454_v27 }
 0x2f1   :  { %2400 = vmatprep.subr.bf16.mxu0 %v3459_v28  ;;  %2482 = vmatprep.subr.bf16.mxu1 %v3462_v29 }
 0x2f4   :  { %2401 = vmatpush1.bf16.msra.mxu0 %v3457_v30  ;;  %2483 = vmatpush1.bf16.msra.mxu1 %v3460_v31 }
 0x2f5   :  { %2402 = vmatprep.subr.bf16.mxu0 %v3465_v32  ;;  %2484 = vmatprep.subr.bf16.mxu1 %v3468_v33 }
 0x2f8   :  { %2403 = vmatpush1.bf16.msra.mxu0 %v3463_v34  ;;  %2485 = vmatpush1.bf16.msra.mxu1 %v3466_v35 }
 0x2f9   :  { %2404 = vmatprep.subr.bf16.mxu0 %v3471_v36  ;;  %2486 = vmatprep.subr.bf16.mxu1 %v3474_v37 }
 0x2fc   :  { %2405 = vmatpush1.bf16.msra.mxu0 %v3469_v38  ;;  %2487 = vmatpush1.bf16.msra.mxu1 %v3472_v39 }
 0x2fd   :  { %2406 = vmatprep.subr.bf16.mxu0 %v3477_v41  ;;  %2488 = vmatprep.subr.bf16.mxu1 %v3480_v50 }
 0x300   :  { %2407 = vmatpush1.bf16.msra.mxu0 %v3475_v48  ;;  %2489 = vmatpush1.bf16.msra.mxu1 %v3478_v43 }
 0x301   :  { %2408 = vmatprep.subr.bf16.mxu0 %v3483_v16  ;;  %2490 = vmatprep.subr.bf16.mxu1 %v3486_v42 }
 0x304   :  { %2409 = vmatpush1.bf16.msra.mxu0 %v3481_v44  ;;  %2491 = vmatpush1.bf16.msra.mxu1 %v3484_v46 }
 0x305   :  { %2410 = vmatprep.subr.bf16.mxu0 %v3489_v47  ;;  %2492 = vmatprep.subr.bf16.mxu1 %v3492_v54 }
 0x308   :  { %2411 = vmatpush1.bf16.msra.mxu0 %v3487_v55  ;;  %2493 = vmatpush1.bf16.msra.mxu1 %v3490_v56 }
 0x309   :  { %2412 = vmatprep.subr.bf16.mxu0 %v3495_v57  ;;  %2494 = vmatprep.subr.bf16.mxu1 %v3498_v58 }
 0x30c   :  { %2413 = vmatpush1.bf16.msra.mxu0 %v3493_v59  ;;  %2495 = vmatpush1.bf16.msra.mxu1 %v3496_v60 }
 0x30d   :  { %2414 = vmatprep.subr.bf16.mxu0 %v3501_v61  ;;  %2496 = vmatprep.subr.bf16.mxu1 %v3504_v62 }
 0x310   :  { %2415 = vmatpush1.bf16.msra.mxu0 %v3499_v0  ;;  %2497 = vmatpush1.bf16.msra.mxu1 %v3502_v1 }
 0x311   :  { %2725 = vmatprep.subr.bf16.mxu0 %v2718_v8  ;;  %2765 = vmatprep.subr.bf16.mxu1 %v2720_v10 }
 0x313   :  { %2417 = vmatmul.mubr.bf16.vlgmr.msra.gmra.mrb[8].mxu0 %v1573_v3  ;;  %2499 = vmatmul.mubr.bf16.vlgmr.msra.gmra.mrb[8].mxu1 %v1573_v3 }
 0x319   :  { %2726 = vmatpush1.bf16.xpose.msra.mxu0 %v2717_v7  ;;  %2766 = vmatpush1.bf16.xpose.msra.mxu1 %v2719_v9 }
 0x3e6   :  { %v3859_v20 = vpop.f32.mrb[8].mxu0  ;;  %v3861_v45 = vpop.f32.mrb[8].mxu1 }
 0x3e7   :  { %v2511_v19 = vrot.slane %v3859_v20, 4  ;;  %v2539_v13 = vmul.f32 %v3859_v20, %v3859_v20  ;;  %v2523_v14 = vrot.slane %v3861_v45, 4  ;;  %v2541_v11 = vmul.f32 %v3861_v45, %v3861_v45  ;;  %v3869_v15 = vpop.f32.mrb[9].mxu0  ;;  %v3871_v17 = vpop.f32.mrb[9].mxu1 }
 0x3e8   :  { %v2517_v18 = vrot.slane %v3869_v15, 4  ;;  %v2540_v21 = vmul.f32 %v3869_v15, %v3869_v15  ;;  %v2529_v22 = vrot.slane %v3871_v17, 4  ;;  %v2542_v23 = vmul.f32 %v3871_v17, %v3871_v17  ;;  %v2422_v24 = vpop.f32.mrb[10].mxu0  ;;  %v2504_v25 = vpop.f32.mrb[10].mxu1 }
 0x3e9   :  { %v2512_v26 = vadd.f32 %v2511_v19, %v3859_v20  ;;  %v2543_v27 = vrot.slane %v2539_v13, 4  ;;  %v2524_v28 = vadd.f32 %v2523_v14, %v3861_v45  ;;  %v2555_v29 = vrot.slane %v2541_v11, 4  ;;  %v2423_v30 = vpop.f32.mrb[11].mxu0  ;;  %v2505_v31 = vpop.f32.mrb[11].mxu1 }
 0x3ea   :  { %v2518_v32 = vadd.f32 %v2517_v18, %v3869_v15  ;;  %v2549_v33 = vrot.slane %v2540_v21, 4  ;;  %v2530_v34 = vadd.f32 %v2529_v22, %v3871_v17  ;;  %v2561_v35 = vrot.slane %v2542_v23, 4 }
 0x3eb   :  { %v2513_v36 = vrot.slane %v2512_v26, 2  ;;  %v2544_v37 = vadd.f32 %v2543_v27, %v2539_v13  ;;  %v2525_v38 = vrot.slane %v2524_v28, 2  ;;  %v2556_v39 = vadd.f32 %v2555_v29, %v2541_v11 }
 0x3ec   :  { %v2519_v41 = vrot.slane %v2518_v32, 2  ;;  %v2550_v50 = vadd.f32 %v2549_v33, %v2540_v21  ;;  %v2531_v48 = vrot.slane %v2530_v34, 2  ;;  %v2562_v43 = vadd.f32 %v2561_v35, %v2542_v23 }
 0x3ed   :  { %v2514_v16 = vadd.f32 %v2513_v36, %v2512_v26  ;;  %v2545_v42 = vrot.slane %v2544_v37, 2  ;;  %v2526_v44 = vadd.f32 %v2525_v38, %v2524_v28  ;;  %v2557_v46 = vrot.slane %v2556_v39, 2 }
 0x3ee   :  { %v2520_v47 = vadd.f32 %v2519_v41, %v2518_v32  ;;  %v2551_v54 = vrot.slane %v2550_v50, 2  ;;  %v2532_v55 = vadd.f32 %v2531_v48, %v2530_v34  ;;  %v2563_v56 = vrot.slane %v2562_v43, 2 }
 0x3ef   :  { %v2515_v57 = vrot.slane %v2514_v16, 1  ;;  %v2546_v58 = vadd.f32 %v2545_v42, %v2544_v37  ;;  %v2527_v59 = vrot.slane %v2526_v44, 1  ;;  %v2558_v60 = vadd.f32 %v2557_v46, %v2556_v39 }
 0x3f0   :  { %v2521_v61 = vrot.slane %v2520_v47, 1  ;;  %v2552_v62 = vadd.f32 %v2551_v54, %v2550_v50  ;;  %v2533_v63 = vrot.slane %v2532_v55, 1  ;;  %v2564_v0 = vadd.f32 %v2563_v56, %v2562_v43 }
 0x3f1   :  { %v2516_v1 = vadd.f32 %v2515_v57, %v2514_v16  ;;  %v2547_v2 = vrot.slane %v2546_v58, 1  ;;  %v2528_v3 = vadd.f32 %v2527_v59, %v2526_v44  ;;  %v2559_v4 = vrot.slane %v2558_v60, 1  ;;  %v2508_v44 = vld [vmem:[#allocation9 + $0x4] ss:$8 sm:$0xf] }
 0x3f2   :  { %v2522_v6 = vadd.f32 %v2521_v61, %v2520_v47  ;;  %v2553_v8 = vrot.slane %v2552_v62, 1  ;;  %v2534_v10 = vadd.f32 %v2533_v63, %v2532_v55  ;;  %v2565_v12 = vrot.slane %v2564_v0, 1 }
 0x3f3   :  { %v2535_v5 = vmul.f32 0.125, %v2516_v1  ;;  %v2548_v7 = vadd.f32 %v2547_v2, %v2546_v58  ;;  %v2537_v9 = vmul.f32 0.125, %v2528_v3  ;;  %v2560_v19 = vadd.f32 %v2559_v4, %v2558_v60 }
 0x3f4   :  { %v2536_v13 = vmul.f32 0.125, %v2522_v6  ;;  %v2554_v14 = vadd.f32 %v2553_v8, %v2552_v62  ;;  %v2538_v11 = vmul.f32 0.125, %v2534_v10  ;;  %v2566_v18 = vadd.f32 %v2565_v12, %v2564_v0  ;;  %v2510_v10 = vld [vmem:[#allocation9 + $0x5] ss:$8 sm:$0xf] }
 0x3f5   :  { %v2567_v21 = vmul.f32 0.125, %v2548_v7  ;;  %v2571_v22 = vmul.f32 %v2535_v5, %v2535_v5  ;;  %v2569_v23 = vmul.f32 0.125, %v2560_v19  ;;  %v2573_v24 = vmul.f32 %v2537_v9, %v2537_v9 }
 0x3f6   :  { %v2568_v25 = vmul.f32 0.125, %v2554_v14  ;;  %v2572_v26 = vmul.f32 %v2536_v13, %v2536_v13  ;;  %v2570_v27 = vmul.f32 0.125, %v2566_v18  ;;  %v2574_v28 = vmul.f32 %v2538_v11, %v2538_v11 }
 0x3f7   :  { %v2575_v29 = vsub.f32 %v2567_v21, %v2571_v22  ;;  %v2577_v30 = vsub.f32 %v2569_v23, %v2573_v24 }
 0x3f8   :  { %v2576_v31 = vsub.f32 %v2568_v25, %v2572_v26  ;;  %v2578_v32 = vsub.f32 %v2570_v27, %v2574_v28  ;;  %v2805_v27 = vld [vmem:[#allocation9 + $0x6] ss:$0 sm:$0xff] }
 0x3f9   :  { %v2579_v33 = vadd.f32 1e-05, %v2575_v29  ;;  %v2581_v34 = vadd.f32 1e-05, %v2577_v30 }
 0x3fa   :  { %v2580_v35 = vadd.f32 1e-05, %v2576_v31  ;;  %v2582_v36 = vadd.f32 1e-05, %v2578_v32 }
 0x3fb   :  { %3521 = vrsqrt.f32 %v2579_v33 }
 0x3fc   :  { %3523 = vrsqrt.f32 %v2581_v34 }
 0x3fd   :  { %3525 = vrsqrt.f32 %v2580_v35 }
 0x3fe   :  { %3527 = vrsqrt.f32 %v2582_v36 }
 0x405   :  { %v3522_v37 = vpop.eup %3521 }
 0x406   :  { %v3524_v38 = vpop.eup %3523 }
 0x407   :  { %v3526_v39 = vpop.eup %3525 }
 0x408   :  { %v3528_v41 = vpop.eup %3527  ;;  %v2591_v50 = vcombine.low %v3522_v37, %v3526_v39 }
 0x409   :  { %v2592_v48 = vcombine.low %v3524_v38, %v3528_v41 }
 0x40a   :  { %v2599_v43 = vrot.slane %v2591_v50, %v3779_v40 }
 0x40b   :  { %v2606_v16 = vrot.slane %v2592_v48, %v3779_v40 }
 0x40d   :  { %v2607_v42 = vcombine.low %v2599_v43, %v2606_v16 }
 0x40f   :  { %v2614_v46 = vrot.slane %v2607_v42, %v3779_v40 }
 0x411   :  { %v2616_v47 = vmul.f32 %v2614_v46, %v2508_v44 }
 0x413   :  { %v2621_v54 = vrot.slane %v2616_v47, %v3783_v49  ;;  %v2625_v55 = vrot.slane %v2616_v47, %v3786_v51  ;;  %v2629_v56 = vrot.slane %v2616_v47, %v3788_v52  ;;  %v2633_v57 = vrot.slane %v2616_v47, %v3790_v53 }
 0x415   :  { %v2638_v58 = vmul.f32 %v2621_v54, %v2535_v5  ;;  %v2639_v59 = vmul.f32 %v2625_v55, %v2536_v13  ;;  %v2640_v60 = vmul.f32 %v2629_v56, %v2537_v9  ;;  %v2641_v61 = vmul.f32 %v2633_v57, %v2538_v11 }
 0x416   :  { %v2675_v62 = vmul.f32 %v2633_v57, %v3871_v17  ;;  %v2673_v63 = vmul.f32 %v2625_v55, %v3869_v15  ;;  %v2672_v0 = vmul.f32 %v2621_v54, %v3859_v20  ;;  %v2674_v1 = vmul.f32 %v2629_v56, %v3861_v45 }
 0x417   :  { %v2646_v2 = vcombine.low %v2638_v58, %v2639_v59  ;;  %v2647_v3 = vcombine.low %v2640_v60, %v2641_v61 }
 0x419   :  { %v2654_v4 = vrot.slane %v2646_v2, %v3779_v40  ;;  %v2661_v6 = vrot.slane %v2647_v3, %v3779_v40 }
 0x41b   :  { %v2662_v8 = vcombine.low %v2654_v4, %v2661_v6 }
 0x41d   :  { %v2669_v12 = vrot.slane %v2662_v8, %v3779_v40 }
 0x41f   :  { %v2671_v5 = vsub.f32 %v2510_v10, %v2669_v12 }
 0x421   :  { %v2692_v7 = vrot.slane %v2671_v5, %v3790_v53  ;;  %v2684_v17 = vrot.slane %v2671_v5, %v3786_v51  ;;  %v2680_v15 = vrot.slane %v2671_v5, %v3783_v49  ;;  %v2688_v20 = vrot.slane %v2671_v5, %v3788_v52 }
 0x423   :  { %v2700_v45 = vadd.f32 %v2692_v7, %v2675_v62  ;;  %v2698_v9 = vadd.f32 %v2684_v17, %v2673_v63  ;;  %v2697_v19 = vadd.f32 %v2680_v15, %v2672_v0  ;;  %v2699_v13 = vadd.f32 %v2688_v20, %v2674_v1 }
 0x425   :  { %vm2702_vm9 = vcmp.ge.f32.partialorder %v2698_v9, 0.0  ;;  %v2706_v14 = vmul.f32 0.01, %v2698_v9  ;;  %vm2704_vm10 = vcmp.ge.f32.partialorder %v2700_v45, 0.0  ;;  %v2708_v11 = vmul.f32 0.01, %v2700_v45 }
 0x426   :  { %vm2701_vm11 = vcmp.ge.f32.partialorder %v2697_v19, 0.0  ;;  %v2705_v18 = vmul.f32 0.01, %v2697_v19  ;;  %vm2703_vm12 = vcmp.ge.f32.partialorder %v2699_v13, 0.0  ;;  %v2707_v40 = vmul.f32 0.01, %v2699_v13 }
 0x427   :  { %v2710_v21 = vsel %vm2702_vm9, %v2698_v9, %v2706_v14  ;;  %v2712_v53 = vsel %vm2704_vm10, %v2700_v45, %v2708_v11 }
 0x428   :  { %v2722_v22 = vpack.c.bf16 %v2710_v21, %v2710_v21  ;;  %v2724_v51 = vpack.c.bf16 %v2712_v53, %v2712_v53  ;;  %v2709_v23 = vsel %vm2701_vm11, %v2697_v19, %v2705_v18  ;;  %v2711_v49 = vsel %vm2703_vm12, %v2699_v13, %v2707_v40 }
 0x429   :  { %v2721_v24 = vpack.c.bf16 %v2709_v23, %v2709_v23  ;;  %v2723_v52 = vpack.c.bf16 %v2711_v49, %v2711_v49 }
 0x42a   :  { %2757 = vmatprep.mubr.bf16.mxu0 %v2722_v22  ;;  %2797 = vmatprep.mubr.bf16.mxu1 %v2724_v51 }
 0x42b   :  { %2758 = vmatmul.mubr.bf16.vlgmr.msra.gmra.mrb[12].mxu0 %v2721_v24  ;;  %2798 = vmatmul.mubr.bf16.vlgmr.msra.gmra.mrb[12].mxu1 %v2723_v52 }
 0x4fe   :  { %v2759_v25 = vpop.f32.mrb[12].mxu0  ;;  %v2799_v26 = vpop.f32.mrb[12].mxu1 }
 0x4ff   :  { %v2800_v28 = vadd.f32 %v2799_v26, %v2759_v25  ;;  %v2761_v29 = vpop.f32.mrb[13].mxu0  ;;  %v2801_v30 = vpop.f32.mrb[13].mxu1 }
 0x500   :  { %v2762_v31 = vpop.f32.mrb[14].mxu0  ;;  %v2802_v32 = vpop.f32.mrb[14].mxu1 }
 0x501   :  { %v2806_v33 = vadd.f32 %v2805_v27, %v2800_v28  ;;  %v2763_v34 = vpop.f32.mrb[15].mxu0  ;;  %v2803_v35 = vpop.f32.mrb[15].mxu1 }
 0x503   :  { %2808 = vst.msk [vmem:[%s3909_s5] sm:$0xff] %vm2807_vm13, %v2806_v33 }
 0x504   :  { %2813 = vsyncpa [#allocation3], 1 }
 0x505   :  { %2814 = vsyncpa [#allocation5], 1 }
 0x506   :  { %2815 = vsyncpa [#allocation8], 1 }

</bundles_post_ra>
